<compile_context>
chip_gen: v5e
topology: v5e:2x2
jax: 0.10.0
libtpu: 0.0.40
codegen_flags: <defaults>
</compile_context>

<pallas_src>
import math
import functools

import jax
import jax.numpy as jnp
from jax import lax
from jax.experimental import pallas as pl
from jax.experimental.pallas import tpu as pltpu


def _issue_row_gathers(idx_ref, table_hbm, dst_buf, sem, base, tblk, num_rows):
    """Issue `tblk` single-row gather DMAs table_hbm[idx] -> dst_buf[j].

    All copies signal the same DMA semaphore `sem`; the caller performs ONE coalesced
    wait covering the whole (tblk, D) destination buffer. Indices are clamped to avoid
    hard-faulting HBM DMAs on out-of-range ids.
    """
    for j in range(tblk):
        row = jnp.clip(idx_ref[base + j], 0, num_rows - 1)
        pltpu.make_async_copy(
            table_hbm.at[pl.ds(row, 1), :],
            dst_buf.at[pl.ds(j, 1), :],
            sem,
        ).start()


def _wait_block(buf_view, sem):
    # Coalesced wait: DMA semaphores accumulate bytes copied, so waiting on a
    # descriptor whose destination is the full (tblk, D) buffer waits for all the
    # per-row copies that signaled `sem`.
    pltpu.make_async_copy(buf_view, buf_view, sem).wait()


def _emb_kernel_posnone(ids_ref, emb_hbm, pe_ref, o_ref, ebuf, sems, *,
                        tblk, scale, seq_len, num_token):
    # ids_ref: SMEM (B*S,) int32 (scalar-prefetched)
    # emb_hbm: HBM (V, D);  pe_ref: auto-pipelined VMEM block (tblk, D)
    # o_ref: VMEM output block (1, tblk, D)
    # ebuf: VMEM scratch (2, tblk, D) double buffer; sems: DMA sems (2,)
    b = pl.program_id(0)
    sb = pl.program_id(1)
    nsb = seq_len // tblk
    slot = lax.rem(sb, 2)
    base = b * seq_len + sb * tblk

    @pl.when(sb == 0)
    def _prime():
        _issue_row_gathers(ids_ref, emb_hbm, ebuf.at[slot], sems.at[slot],
                           base, tblk, num_token)

    @pl.when(sb + 1 < nsb)
    def _prefetch_next():
        _issue_row_gathers(ids_ref, emb_hbm, ebuf.at[1 - slot], sems.at[1 - slot],
                           base + tblk, tblk, num_token)

    _wait_block(ebuf.at[slot], sems.at[slot])

    # emb(x) * sqrt(dim_model) + pos_enc[sb*tblk : (sb+1)*tblk]
    # TODO(synk): nn.Dropout is identity in eval mode; training-mode stochastic dropout
    # (matching torch RNG) is not reproduced here.
    o_ref[0] = (ebuf[slot].astype(jnp.float32) * scale
                + pe_ref[...].astype(jnp.float32)).astype(o_ref.dtype)


def _emb_kernel_pos(ids_ref, pos_ref, emb_hbm, pe_hbm, o_ref, ebuf, pbuf, sems, *,
                    tblk, scale, seq_len, num_token, max_seq_len):
    # Explicit-pos path: gather both embedding and pos_enc rows (double-buffered,
    # one coalesced wait per buffer).
    b = pl.program_id(0)
    sb = pl.program_id(1)
    nsb = seq_len // tblk
    slot = lax.rem(sb, 2)
    base = b * seq_len + sb * tblk

    def issue(blk_base, s):
        _issue_row_gathers(ids_ref, emb_hbm, ebuf.at[s], sems.at[0, s],
                           blk_base, tblk, num_token)
        _issue_row_gathers(pos_ref, pe_hbm, pbuf.at[s], sems.at[1, s],
                           blk_base, tblk, max_seq_len)

    @pl.when(sb == 0)
    def _prime():
        issue(base, slot)

    @pl.when(sb + 1 < nsb)
    def _prefetch_next():
        issue(base + tblk, 1 - slot)

    _wait_block(ebuf.at[slot], sems.at[0, slot])
    _wait_block(pbuf.at[slot], sems.at[1, slot])

    o_ref[0] = (ebuf[slot].astype(jnp.float32) * scale
                + pbuf[slot].astype(jnp.float32)).astype(o_ref.dtype)


def embedding_layer(token_ids, emb_weight, pos_enc, pos=None, *, tblk=256):
    """token_ids: (B, S) int; emb_weight: (V, D); pos_enc: (L, D); pos: None or ints
    broadcastable to (B, S). Returns (B, S, D)."""
    B, S = token_ids.shape
    V, D = emb_weight.shape
    L, D2 = pos_enc.shape
    assert D == D2, "pos_enc last dim must equal dim_model"

    # Clamp the token block to the sequence; keep it sublane-aligned.
    # (Use a multiple of 16 for bf16 tables / 32 for int8 to keep packed tiles full.)
    tblk = min(tblk, S)
    assert S % tblk == 0, "sequence length must be a multiple of the token block"
    assert tblk % 8 == 0, "token block must be a multiple of 8 (f32 sublane tile)"

    scale = math.sqrt(D)
    ids_flat = token_ids.astype(jnp.int32).reshape(B * S)
    out_shape = jax.ShapeDtypeStruct((B, S, D), emb_weight.dtype)
    grid = (B, S // tblk)

    itemsize = jnp.dtype(emb_weight.dtype).itemsize
    cost = pl.CostEstimate(
        flops=2 * B * S * D,
        transcendentals=0,
        bytes_accessed=B * S * D * itemsize * 3,   # gather read + pos read + write
    )
    cparams = pltpu.CompilerParams(
        dimension_semantics=("parallel", "arbitrary"))

    if pos is None:
        # PyTorch `x += self.pos_enc`: positions are 0..S-1 for every batch row
        # (exact torch broadcast requires S == max_seq_len; S <= L is a superset).
        assert S <= L, "pos=None requires seq_len <= max_seq_len"
        kernel = functools.partial(_emb_kernel_posnone, tblk=tblk, scale=scale,
                                   seq_len=S, num_token=V)
        return pl.pallas_call(
            kernel,
            out_shape=out_shape,
            grid_spec=pltpu.PrefetchScalarGridSpec(
                num_scalar_prefetch=1,                      # flat token ids -> SMEM
                grid=grid,
                in_specs=[
                    pl.BlockSpec(memory_space=pl.ANY),      # embedding table in HBM
                    pl.BlockSpec((tblk, D), lambda b, sb, ids: (sb, 0)),  # pos_enc slab
                ],
                out_specs=pl.BlockSpec((1, tblk, D), lambda b, sb, ids: (b, sb, 0)),
                scratch_shapes=[
                    pltpu.VMEM((2, tblk, D), emb_weight.dtype),   # double-buffered gather
                    pltpu.SemaphoreType.DMA((2,)),
                ],
            ),
            compiler_params=cparams,
            cost_estimate=cost,
        )(ids_flat, emb_weight, pos_enc)

    positions = jnp.broadcast_to(jnp.asarray(pos, dtype=jnp.int32), (B, S)).reshape(B * S)
    kernel = functools.partial(_emb_kernel_pos, tblk=tblk, scale=scale,
                               seq_len=S, num_token=V, max_seq_len=L)
    return pl.pallas_call(
        kernel,
        out_shape=out_shape,
        grid_spec=pltpu.PrefetchScalarGridSpec(
            num_scalar_prefetch=2,                          # flat ids + flat positions
            grid=grid,
            in_specs=[
                pl.BlockSpec(memory_space=pl.ANY),          # embedding table in HBM
                pl.BlockSpec(memory_space=pl.ANY),          # pos_enc table in HBM
            ],
            out_specs=pl.BlockSpec((1, tblk, D), lambda b, sb, ids, ps: (b, sb, 0)),
            scratch_shapes=[
                pltpu.VMEM((2, tblk, D), emb_weight.dtype),
                pltpu.VMEM((2, tblk, D), pos_enc.dtype),
                pltpu.SemaphoreType.DMA((2, 2)),
            ],
        ),
        compiler_params=cparams,
        cost_estimate=cost,
    )(ids_flat, positions, emb_weight, pos_enc)


def make_pos_enc(max_seq_len, dim_model):
    """Matches the PyTorch double loop: both sin and cos use exponent idx/dim_model
    where idx is the even index (NOT the canonical Vaswani formulation)."""
    pos = jnp.arange(max_seq_len, dtype=jnp.float32)[:, None]           # (L, 1)
    idx = jnp.arange(0, dim_model, 2, dtype=jnp.float32)[None, :]       # (1, D/2)
    angle = pos / jnp.power(10000.0, idx / dim_model)                   # (L, D/2)
    pe = jnp.zeros((max_seq_len, dim_model), dtype=jnp.float32)
    pe = pe.at[:, 0::2].set(jnp.sin(angle))
    pe = pe.at[:, 1::2].set(jnp.cos(angle))
    return pe


def _reference(token_ids, emb_weight, pos_enc, pos=None):
    """Pure-JAX reference mirroring the PyTorch forward (eval mode)."""
    D = emb_weight.shape[1]
    x = emb_weight[token_ids] * math.sqrt(D)
    if pos is None:
        S = token_ids.shape[1]
        x = x + pos_enc[:S][None, :, :]
    else:
        x = x + pos_enc[jnp.asarray(pos)]
    return x


if __name__ == "__main__":
    num_token, dim_model, max_seq_len, d_prob = 1000, 128, 16, 0.1
    B, S = 2, 16

    key = jax.random.PRNGKey(0)
    k_emb, k_ids, k_pos = jax.random.split(key, 3)

    emb_weight = jax.random.normal(k_emb, (num_token, dim_model), dtype=jnp.float32)
    pos_enc = make_pos_enc(max_seq_len, dim_model)
    token_ids = jax.random.randint(k_ids, (B, S), 0, num_token, dtype=jnp.int32)

    # pos=None path, single block per row (tblk clamped to S=16).
    out = embedding_layer(token_ids, emb_weight, pos_enc, pos=None)
    jax.block_until_ready(out)
    ref = _reference(token_ids, emb_weight, pos_enc, None)
    assert out.shape == (B, S, dim_model)
    assert jnp.allclose(out, ref, atol=1e-5, rtol=1e-5), float(jnp.max(jnp.abs(out - ref)))

    # pos=None path with tblk=8 to exercise the multi-step double-buffer/prefetch path.
    out_small = embedding_layer(token_ids, emb_weight, pos_enc, pos=None, tblk=8)
    jax.block_until_ready(out_small)
    assert jnp.allclose(out_small, ref, atol=1e-5, rtol=1e-5), \
        float(jnp.max(jnp.abs(out_small - ref)))

    # Explicit-pos path: x = emb(x)*sqrt(D) + pos_enc[pos]  (also multi-step).
    pos = jax.random.randint(k_pos, (B, S), 0, max_seq_len, dtype=jnp.int32)
    out_pos = embedding_layer(token_ids, emb_weight, pos_enc, pos=pos, tblk=8)
    jax.block_until_ready(out_pos)
    ref_pos = _reference(token_ids, emb_weight, pos_enc, pos)
    assert jnp.allclose(out_pos, ref_pos, atol=1e-5, rtol=1e-5), \
        float(jnp.max(jnp.abs(out_pos - ref_pos)))

    print("KERNEL_OK")
</pallas_src>

<mosaic_0001>
module attributes {stable_mosaic.version = 11 : i64} {
  func.func @_emb_kernel_posnone(%arg0: i32, %arg1: i32, %arg2: memref<32xi32, #tpu.memory_space<smem>>, %arg3: memref<1000x128xf32, #tpu.memory_space<any>>, %arg4: memref<16x128xf32, #tpu.memory_space<vmem>>, %arg5: memref<1x16x128xf32, #tpu.memory_space<vmem>>, %arg6: memref<2x16x128xf32, #tpu.memory_space<vmem>>, %arg7: memref<2x!tpu.dma_semaphore, #tpu.memory_space<semaphore_mem>>) attributes {dimension_semantics = [#tpu.dimension_semantics<parallel>, #tpu.dimension_semantics<arbitrary>], iteration_bounds = array<i64: 2, 1>, scalar_prefetch = 1 : i64, scratch_operands = 2 : i64, tpu.core_type = #tpu.core_type<tc>, window_params = [{}, {transform_indices = @transform_1, window_bounds = array<i64: 16, 128>}, {transform_indices = @transform_2, window_bounds = array<i64: 1, 16, 128>}]} {
    %c2_i32 = arith.constant 2 : i32
    %0 = arith.remsi %arg1, %c2_i32 : i32
    %c16_i32 = arith.constant 16 : i32
    %1 = arith.muli %arg0, %c16_i32 : i32
    %c16_i32_0 = arith.constant 16 : i32
    %2 = arith.muli %arg1, %c16_i32_0 : i32
    %3 = arith.addi %1, %2 : i32
    %c0_i32 = arith.constant 0 : i32
    %4 = arith.cmpi eq, %arg1, %c0_i32 : i32
    %5 = arith.extui %4 : i1 to i32
    %c0_i32_1 = arith.constant 0 : i32
    %6 = arith.cmpi ne, %5, %c0_i32_1 : i32
    scf.if %6 {
      %c0_i32_14 = arith.constant 0 : i32
      %27 = arith.addi %3, %c0_i32_14 : i32
      %28 = arith.index_cast %27 : i32 to index
      %29 = memref.load %arg2[%28] : memref<32xi32, #tpu.memory_space<smem>>
      %c0_i32_15 = arith.constant 0 : i32
      %c999_i32 = arith.constant 999 : i32
      %30 = arith.maxsi %c0_i32_15, %29 : i32
      %31 = arith.minsi %c999_i32, %30 : i32
      %c0_i32_16 = arith.constant 0 : i32
      %32 = tpu.memref_slice %arg3[%31, %c0_i32_16] : memref<1000x128xf32, #tpu.memory_space<any>> -> memref<1x128xf32, #tpu.memory_space<any>>
      %c0_i32_17 = arith.constant 0 : i32
      %c0_i32_18 = arith.constant 0 : i32
      %33 = tpu.memref_slice %arg6[%0, %c0_i32_17, %c0_i32_18] : memref<2x16x128xf32, #tpu.memory_space<vmem>> -> memref<1x16x128xf32, #tpu.memory_space<vmem>>
      %34 = tpu.memref_squeeze %33 : memref<1x16x128xf32, #tpu.memory_space<vmem>> -> memref<16x128xf32, #tpu.memory_space<vmem>>
      %c0_i32_19 = arith.constant 0 : i32
      %c0_i32_20 = arith.constant 0 : i32
      %35 = tpu.memref_slice %34[%c0_i32_19, %c0_i32_20] : memref<16x128xf32, #tpu.memory_space<vmem>> -> memref<1x128xf32, #tpu.memory_space<vmem>>
      %36 = tpu.memref_slice %arg7[%0] : memref<2x!tpu.dma_semaphore, #tpu.memory_space<semaphore_mem>> -> memref<1x!tpu.dma_semaphore, #tpu.memory_space<semaphore_mem>>
      %37 = tpu.memref_squeeze %36 : memref<1x!tpu.dma_semaphore, #tpu.memory_space<semaphore_mem>> -> memref<!tpu.dma_semaphore, #tpu.memory_space<semaphore_mem>>
      tpu.enqueue_dma source(%32 : memref<1x128xf32, #tpu.memory_space<any>>) target(%35 : memref<1x128xf32, #tpu.memory_space<vmem>>) target_semaphore(%37 : memref<!tpu.dma_semaphore, #tpu.memory_space<semaphore_mem>>)
      %c1_i32_21 = arith.constant 1 : i32
      %38 = arith.addi %3, %c1_i32_21 : i32
      %39 = arith.index_cast %38 : i32 to index
      %40 = memref.load %arg2[%39] : memref<32xi32, #tpu.memory_space<smem>>
      %c0_i32_22 = arith.constant 0 : i32
      %c999_i32_23 = arith.constant 999 : i32
      %41 = arith.maxsi %c0_i32_22, %40 : i32
      %42 = arith.minsi %c999_i32_23, %41 : i32
      %c0_i32_24 = arith.constant 0 : i32
      %43 = tpu.memref_slice %arg3[%42, %c0_i32_24] : memref<1000x128xf32, #tpu.memory_space<any>> -> memref<1x128xf32, #tpu.memory_space<any>>
      %c0_i32_25 = arith.constant 0 : i32
      %c0_i32_26 = arith.constant 0 : i32
      %44 = tpu.memref_slice %arg6[%0, %c0_i32_25, %c0_i32_26] : memref<2x16x128xf32, #tpu.memory_space<vmem>> -> memref<1x16x128xf32, #tpu.memory_space<vmem>>
      %45 = tpu.memref_squeeze %44 : memref<1x16x128xf32, #tpu.memory_space<vmem>> -> memref<16x128xf32, #tpu.memory_space<vmem>>
      %c1_i32_27 = arith.constant 1 : i32
      %c0_i32_28 = arith.constant 0 : i32
      %46 = tpu.memref_slice %45[%c1_i32_27, %c0_i32_28] : memref<16x128xf32, #tpu.memory_space<vmem>> -> memref<1x128xf32, #tpu.memory_space<vmem>>
      %47 = tpu.memref_slice %arg7[%0] : memref<2x!tpu.dma_semaphore, #tpu.memory_space<semaphore_mem>> -> memref<1x!tpu.dma_semaphore, #tpu.memory_space<semaphore_mem>>
      %48 = tpu.memref_squeeze %47 : memref<1x!tpu.dma_semaphore, #tpu.memory_space<semaphore_mem>> -> memref<!tpu.dma_semaphore, #tpu.memory_space<semaphore_mem>>
      tpu.enqueue_dma source(%43 : memref<1x128xf32, #tpu.memory_space<any>>) target(%46 : memref<1x128xf32, #tpu.memory_space<vmem>>) target_semaphore(%48 : memref<!tpu.dma_semaphore, #tpu.memory_space<semaphore_mem>>)
      %c2_i32_29 = arith.constant 2 : i32
      %49 = arith.addi %3, %c2_i32_29 : i32
      %50 = arith.index_cast %49 : i32 to index
      %51 = memref.load %arg2[%50] : memref<32xi32, #tpu.memory_space<smem>>
      %c0_i32_30 = arith.constant 0 : i32
      %c999_i32_31 = arith.constant 999 : i32
      %52 = arith.maxsi %c0_i32_30, %51 : i32
      %53 = arith.minsi %c999_i32_31, %52 : i32
      %c0_i32_32 = arith.constant 0 : i32
      %54 = tpu.memref_slice %arg3[%53, %c0_i32_32] : memref<1000x128xf32, #tpu.memory_space<any>> -> memref<1x128xf32, #tpu.memory_space<any>>
      %c0_i32_33 = arith.constant 0 : i32
      %c0_i32_34 = arith.constant 0 : i32
      %55 = tpu.memref_slice %arg6[%0, %c0_i32_33, %c0_i32_34] : memref<2x16x128xf32, #tpu.memory_space<vmem>> -> memref<1x16x128xf32, #tpu.memory_space<vmem>>
      %56 = tpu.memref_squeeze %55 : memref<1x16x128xf32, #tpu.memory_space<vmem>> -> memref<16x128xf32, #tpu.memory_space<vmem>>
      %c2_i32_35 = arith.constant 2 : i32
      %c0_i32_36 = arith.constant 0 : i32
      %57 = tpu.memref_slice %56[%c2_i32_35, %c0_i32_36] : memref<16x128xf32, #tpu.memory_space<vmem>> -> memref<1x128xf32, #tpu.memory_space<vmem>>
      %58 = tpu.memref_slice %arg7[%0] : memref<2x!tpu.dma_semaphore, #tpu.memory_space<semaphore_mem>> -> memref<1x!tpu.dma_semaphore, #tpu.memory_space<semaphore_mem>>
      %59 = tpu.memref_squeeze %58 : memref<1x!tpu.dma_semaphore, #tpu.memory_space<semaphore_mem>> -> memref<!tpu.dma_semaphore, #tpu.memory_space<semaphore_mem>>
      tpu.enqueue_dma source(%54 : memref<1x128xf32, #tpu.memory_space<any>>) target(%57 : memref<1x128xf32, #tpu.memory_space<vmem>>) target_semaphore(%59 : memref<!tpu.dma_semaphore, #tpu.memory_space<semaphore_mem>>)
      %c3_i32 = arith.constant 3 : i32
      %60 = arith.addi %3, %c3_i32 : i32
      %61 = arith.index_cast %60 : i32 to index
      %62 = memref.load %arg2[%61] : memref<32xi32, #tpu.memory_space<smem>>
      %c0_i32_37 = arith.constant 0 : i32
      %c999_i32_38 = arith.constant 999 : i32
      %63 = arith.maxsi %c0_i32_37, %62 : i32
      %64 = arith.minsi %c999_i32_38, %63 : i32
      %c0_i32_39 = arith.constant 0 : i32
      %65 = tpu.memref_slice %arg3[%64, %c0_i32_39] : memref<1000x128xf32, #tpu.memory_space<any>> -> memref<1x128xf32, #tpu.memory_space<any>>
      %c0_i32_40 = arith.constant 0 : i32
      %c0_i32_41 = arith.constant 0 : i32
      %66 = tpu.memref_slice %arg6[%0, %c0_i32_40, %c0_i32_41] : memref<2x16x128xf32, #tpu.memory_space<vmem>> -> memref<1x16x128xf32, #tpu.memory_space<vmem>>
      %67 = tpu.memref_squeeze %66 : memref<1x16x128xf32, #tpu.memory_space<vmem>> -> memref<16x128xf32, #tpu.memory_space<vmem>>
      %c3_i32_42 = arith.constant 3 : i32
      %c0_i32_43 = arith.constant 0 : i32
      %68 = tpu.memref_slice %67[%c3_i32_42, %c0_i32_43] : memref<16x128xf32, #tpu.memory_space<vmem>> -> memref<1x128xf32, #tpu.memory_space<vmem>>
      %69 = tpu.memref_slice %arg7[%0] : memref<2x!tpu.dma_semaphore, #tpu.memory_space<semaphore_mem>> -> memref<1x!tpu.dma_semaphore, #tpu.memory_space<semaphore_mem>>
      %70 = tpu.memref_squeeze %69 : memref<1x!tpu.dma_semaphore, #tpu.memory_space<semaphore_mem>> -> memref<!tpu.dma_semaphore, #tpu.memory_space<semaphore_mem>>
      tpu.enqueue_dma source(%65 : memref<1x128xf32, #tpu.memory_space<any>>) target(%68 : memref<1x128xf32, #tpu.memory_space<vmem>>) target_semaphore(%70 : memref<!tpu.dma_semaphore, #tpu.memory_space<semaphore_mem>>)
      %c4_i32 = arith.constant 4 : i32
      %71 = arith.addi %3, %c4_i32 : i32
      %72 = arith.index_cast %71 : i32 to index
      %73 = memref.load %arg2[%72] : memref<32xi32, #tpu.memory_space<smem>>
      %c0_i32_44 = arith.constant 0 : i32
      %c999_i32_45 = arith.constant 999 : i32
      %74 = arith.maxsi %c0_i32_44, %73 : i32
      %75 = arith.minsi %c999_i32_45, %74 : i32
      %c0_i32_46 = arith.constant 0 : i32
      %76 = tpu.memref_slice %arg3[%75, %c0_i32_46] : memref<1000x128xf32, #tpu.memory_space<any>> -> memref<1x128xf32, #tpu.memory_space<any>>
      %c0_i32_47 = arith.constant 0 : i32
      %c0_i32_48 = arith.constant 0 : i32
      %77 = tpu.memref_slice %arg6[%0, %c0_i32_47, %c0_i32_48] : memref<2x16x128xf32, #tpu.memory_space<vmem>> -> memref<1x16x128xf32, #tpu.memory_space<vmem>>
      %78 = tpu.memref_squeeze %77 : memref<1x16x128xf32, #tpu.memory_space<vmem>> -> memref<16x128xf32, #tpu.memory_space<vmem>>
      %c4_i32_49 = arith.constant 4 : i32
      %c0_i32_50 = arith.constant 0 : i32
      %79 = tpu.memref_slice %78[%c4_i32_49, %c0_i32_50] : memref<16x128xf32, #tpu.memory_space<vmem>> -> memref<1x128xf32, #tpu.memory_space<vmem>>
      %80 = tpu.memref_slice %arg7[%0] : memref<2x!tpu.dma_semaphore, #tpu.memory_space<semaphore_mem>> -> memref<1x!tpu.dma_semaphore, #tpu.memory_space<semaphore_mem>>
      %81 = tpu.memref_squeeze %80 : memref<1x!tpu.dma_semaphore, #tpu.memory_space<semaphore_mem>> -> memref<!tpu.dma_semaphore, #tpu.memory_space<semaphore_mem>>
      tpu.enqueue_dma source(%76 : memref<1x128xf32, #tpu.memory_space<any>>) target(%79 : memref<1x128xf32, #tpu.memory_space<vmem>>) target_semaphore(%81 : memref<!tpu.dma_semaphore, #tpu.memory_space<semaphore_mem>>)
      %c5_i32 = arith.constant 5 : i32
      %82 = arith.addi %3, %c5_i32 : i32
      %83 = arith.index_cast %82 : i32 to index
      %84 = memref.load %arg2[%83] : memref<32xi32, #tpu.memory_space<smem>>
      %c0_i32_51 = arith.constant 0 : i32
      %c999_i32_52 = arith.constant 999 : i32
      %85 = arith.maxsi %c0_i32_51, %84 : i32
      %86 = arith.minsi %c999_i32_52, %85 : i32
      %c0_i32_53 = arith.constant 0 : i32
      %87 = tpu.memref_slice %arg3[%86, %c0_i32_53] : memref<1000x128xf32, #tpu.memory_space<any>> -> memref<1x128xf32, #tpu.memory_space<any>>
      %c0_i32_54 = arith.constant 0 : i32
      %c0_i32_55 = arith.constant 0 : i32
      %88 = tpu.memref_slice %arg6[%0, %c0_i32_54, %c0_i32_55] : memref<2x16x128xf32, #tpu.memory_space<vmem>> -> memref<1x16x128xf32, #tpu.memory_space<vmem>>
      %89 = tpu.memref_squeeze %88 : memref<1x16x128xf32, #tpu.memory_space<vmem>> -> memref<16x128xf32, #tpu.memory_space<vmem>>
      %c5_i32_56 = arith.constant 5 : i32
      %c0_i32_57 = arith.constant 0 : i32
      %90 = tpu.memref_slice %89[%c5_i32_56, %c0_i32_57] : memref<16x128xf32, #tpu.memory_space<vmem>> -> memref<1x128xf32, #tpu.memory_space<vmem>>
      %91 = tpu.memref_slice %arg7[%0] : memref<2x!tpu.dma_semaphore, #tpu.memory_space<semaphore_mem>> -> memref<1x!tpu.dma_semaphore, #tpu.memory_space<semaphore_mem>>
      %92 = tpu.memref_squeeze %91 : memref<1x!tpu.dma_semaphore, #tpu.memory_space<semaphore_mem>> -> memref<!tpu.dma_semaphore, #tpu.memory_space<semaphore_mem>>
      tpu.enqueue_dma source(%87 : memref<1x128xf32, #tpu.memory_space<any>>) target(%90 : memref<1x128xf32, #tpu.memory_space<vmem>>) target_semaphore(%92 : memref<!tpu.dma_semaphore, #tpu.memory_space<semaphore_mem>>)
      %c6_i32 = arith.constant 6 : i32
      %93 = arith.addi %3, %c6_i32 : i32
      %94 = arith.index_cast %93 : i32 to index
      %95 = memref.load %arg2[%94] : memref<32xi32, #tpu.memory_space<smem>>
      %c0_i32_58 = arith.constant 0 : i32
      %c999_i32_59 = arith.constant 999 : i32
      %96 = arith.maxsi %c0_i32_58, %95 : i32
      %97 = arith.minsi %c999_i32_59, %96 : i32
      %c0_i32_60 = arith.constant 0 : i32
      %98 = tpu.memref_slice %arg3[%97, %c0_i32_60] : memref<1000x128xf32, #tpu.memory_space<any>> -> memref<1x128xf32, #tpu.memory_space<any>>
      %c0_i32_61 = arith.constant 0 : i32
      %c0_i32_62 = arith.constant 0 : i32
      %99 = tpu.memref_slice %arg6[%0, %c0_i32_61, %c0_i32_62] : memref<2x16x128xf32, #tpu.memory_space<vmem>> -> memref<1x16x128xf32, #tpu.memory_space<vmem>>
      %100 = tpu.memref_squeeze %99 : memref<1x16x128xf32, #tpu.memory_space<vmem>> -> memref<16x128xf32, #tpu.memory_space<vmem>>
      %c6_i32_63 = arith.constant 6 : i32
      %c0_i32_64 = arith.constant 0 : i32
      %101 = tpu.memref_slice %100[%c6_i32_63, %c0_i32_64] : memref<16x128xf32, #tpu.memory_space<vmem>> -> memref<1x128xf32, #tpu.memory_space<vmem>>
      %102 = tpu.memref_slice %arg7[%0] : memref<2x!tpu.dma_semaphore, #tpu.memory_space<semaphore_mem>> -> memref<1x!tpu.dma_semaphore, #tpu.memory_space<semaphore_mem>>
      %103 = tpu.memref_squeeze %102 : memref<1x!tpu.dma_semaphore, #tpu.memory_space<semaphore_mem>> -> memref<!tpu.dma_semaphore, #tpu.memory_space<semaphore_mem>>
      tpu.enqueue_dma source(%98 : memref<1x128xf32, #tpu.memory_space<any>>) target(%101 : memref<1x128xf32, #tpu.memory_space<vmem>>) target_semaphore(%103 : memref<!tpu.dma_semaphore, #tpu.memory_space<semaphore_mem>>)
      %c7_i32 = arith.constant 7 : i32
      %104 = arith.addi %3, %c7_i32 : i32
      %105 = arith.index_cast %104 : i32 to index
      %106 = memref.load %arg2[%105] : memref<32xi32, #tpu.memory_space<smem>>
      %c0_i32_65 = arith.constant 0 : i32
      %c999_i32_66 = arith.constant 999 : i32
      %107 = arith.maxsi %c0_i32_65, %106 : i32
      %108 = arith.minsi %c999_i32_66, %107 : i32
      %c0_i32_67 = arith.constant 0 : i32
      %109 = tpu.memref_slice %arg3[%108, %c0_i32_67] : memref<1000x128xf32, #tpu.memory_space<any>> -> memref<1x128xf32, #tpu.memory_space<any>>
      %c0_i32_68 = arith.constant 0 : i32
      %c0_i32_69 = arith.constant 0 : i32
      %110 = tpu.memref_slice %arg6[%0, %c0_i32_68, %c0_i32_69] : memref<2x16x128xf32, #tpu.memory_space<vmem>> -> memref<1x16x128xf32, #tpu.memory_space<vmem>>
      %111 = tpu.memref_squeeze %110 : memref<1x16x128xf32, #tpu.memory_space<vmem>> -> memref<16x128xf32, #tpu.memory_space<vmem>>
      %c7_i32_70 = arith.constant 7 : i32
      %c0_i32_71 = arith.constant 0 : i32
      %112 = tpu.memref_slice %111[%c7_i32_70, %c0_i32_71] : memref<16x128xf32, #tpu.memory_space<vmem>> -> memref<1x128xf32, #tpu.memory_space<vmem>>
      %113 = tpu.memref_slice %arg7[%0] : memref<2x!tpu.dma_semaphore, #tpu.memory_space<semaphore_mem>> -> memref<1x!tpu.dma_semaphore, #tpu.memory_space<semaphore_mem>>
      %114 = tpu.memref_squeeze %113 : memref<1x!tpu.dma_semaphore, #tpu.memory_space<semaphore_mem>> -> memref<!tpu.dma_semaphore, #tpu.memory_space<semaphore_mem>>
      tpu.enqueue_dma source(%109 : memref<1x128xf32, #tpu.memory_space<any>>) target(%112 : memref<1x128xf32, #tpu.memory_space<vmem>>) target_semaphore(%114 : memref<!tpu.dma_semaphore, #tpu.memory_space<semaphore_mem>>)
      %c8_i32 = arith.constant 8 : i32
      %115 = arith.addi %3, %c8_i32 : i32
      %116 = arith.index_cast %115 : i32 to index
      %117 = memref.load %arg2[%116] : memref<32xi32, #tpu.memory_space<smem>>
      %c0_i32_72 = arith.constant 0 : i32
      %c999_i32_73 = arith.constant 999 : i32
      %118 = arith.maxsi %c0_i32_72, %117 : i32
      %119 = arith.minsi %c999_i32_73, %118 : i32
      %c0_i32_74 = arith.constant 0 : i32
      %120 = tpu.memref_slice %arg3[%119, %c0_i32_74] : memref<1000x128xf32, #tpu.memory_space<any>> -> memref<1x128xf32, #tpu.memory_space<any>>
      %c0_i32_75 = arith.constant 0 : i32
      %c0_i32_76 = arith.constant 0 : i32
      %121 = tpu.memref_slice %arg6[%0, %c0_i32_75, %c0_i32_76] : memref<2x16x128xf32, #tpu.memory_space<vmem>> -> memref<1x16x128xf32, #tpu.memory_space<vmem>>
      %122 = tpu.memref_squeeze %121 : memref<1x16x128xf32, #tpu.memory_space<vmem>> -> memref<16x128xf32, #tpu.memory_space<vmem>>
      %c8_i32_77 = arith.constant 8 : i32
      %c0_i32_78 = arith.constant 0 : i32
      %123 = tpu.memref_slice %122[%c8_i32_77, %c0_i32_78] : memref<16x128xf32, #tpu.memory_space<vmem>> -> memref<1x128xf32, #tpu.memory_space<vmem>>
      %124 = tpu.memref_slice %arg7[%0] : memref<2x!tpu.dma_semaphore, #tpu.memory_space<semaphore_mem>> -> memref<1x!tpu.dma_semaphore, #tpu.memory_space<semaphore_mem>>
      %125 = tpu.memref_squeeze %124 : memref<1x!tpu.dma_semaphore, #tpu.memory_space<semaphore_mem>> -> memref<!tpu.dma_semaphore, #tpu.memory_space<semaphore_mem>>
      tpu.enqueue_dma source(%120 : memref<1x128xf32, #tpu.memory_space<any>>) target(%123 : memref<1x128xf32, #tpu.memory_space<vmem>>) target_semaphore(%125 : memref<!tpu.dma_semaphore, #tpu.memory_space<semaphore_mem>>)
      %c9_i32 = arith.constant 9 : i32
      %126 = arith.addi %3, %c9_i32 : i32
      %127 = arith.index_cast %126 : i32 to index
      %128 = memref.load %arg2[%127] : memref<32xi32, #tpu.memory_space<smem>>
      %c0_i32_79 = arith.constant 0 : i32
      %c999_i32_80 = arith.constant 999 : i32
      %129 = arith.maxsi %c0_i32_79, %128 : i32
      %130 = arith.minsi %c999_i32_80, %129 : i32
      %c0_i32_81 = arith.constant 0 : i32
      %131 = tpu.memref_slice %arg3[%130, %c0_i32_81] : memref<1000x128xf32, #tpu.memory_space<any>> -> memref<1x128xf32, #tpu.memory_space<any>>
      %c0_i32_82 = arith.constant 0 : i32
      %c0_i32_83 = arith.constant 0 : i32
      %132 = tpu.memref_slice %arg6[%0, %c0_i32_82, %c0_i32_83] : memref<2x16x128xf32, #tpu.memory_space<vmem>> -> memref<1x16x128xf32, #tpu.memory_space<vmem>>
      %133 = tpu.memref_squeeze %132 : memref<1x16x128xf32, #tpu.memory_space<vmem>> -> memref<16x128xf32, #tpu.memory_space<vmem>>
      %c9_i32_84 = arith.constant 9 : i32
      %c0_i32_85 = arith.constant 0 : i32
      %134 = tpu.memref_slice %133[%c9_i32_84, %c0_i32_85] : memref<16x128xf32, #tpu.memory_space<vmem>> -> memref<1x128xf32, #tpu.memory_space<vmem>>
      %135 = tpu.memref_slice %arg7[%0] : memref<2x!tpu.dma_semaphore, #tpu.memory_space<semaphore_mem>> -> memref<1x!tpu.dma_semaphore, #tpu.memory_space<semaphore_mem>>
      %136 = tpu.memref_squeeze %135 : memref<1x!tpu.dma_semaphore, #tpu.memory_space<semaphore_mem>> -> memref<!tpu.dma_semaphore, #tpu.memory_space<semaphore_mem>>
      tpu.enqueue_dma source(%131 : memref<1x128xf32, #tpu.memory_space<any>>) target(%134 : memref<1x128xf32, #tpu.memory_space<vmem>>) target_semaphore(%136 : memref<!tpu.dma_semaphore, #tpu.memory_space<semaphore_mem>>)
      %c10_i32 = arith.constant 10 : i32
      %137 = arith.addi %3, %c10_i32 : i32
      %138 = arith.index_cast %137 : i32 to index
      %139 = memref.load %arg2[%138] : memref<32xi32, #tpu.memory_space<smem>>
      %c0_i32_86 = arith.constant 0 : i32
      %c999_i32_87 = arith.constant 999 : i32
      %140 = arith.maxsi %c0_i32_86, %139 : i32
      %141 = arith.minsi %c999_i32_87, %140 : i32
      %c0_i32_88 = arith.constant 0 : i32
      %142 = tpu.memref_slice %arg3[%141, %c0_i32_88] : memref<1000x128xf32, #tpu.memory_space<any>> -> memref<1x128xf32, #tpu.memory_space<any>>
      %c0_i32_89 = arith.constant 0 : i32
      %c0_i32_90 = arith.constant 0 : i32
      %143 = tpu.memref_slice %arg6[%0, %c0_i32_89, %c0_i32_90] : memref<2x16x128xf32, #tpu.memory_space<vmem>> -> memref<1x16x128xf32, #tpu.memory_space<vmem>>
      %144 = tpu.memref_squeeze %143 : memref<1x16x128xf32, #tpu.memory_space<vmem>> -> memref<16x128xf32, #tpu.memory_space<vmem>>
      %c10_i32_91 = arith.constant 10 : i32
      %c0_i32_92 = arith.constant 0 : i32
      %145 = tpu.memref_slice %144[%c10_i32_91, %c0_i32_92] : memref<16x128xf32, #tpu.memory_space<vmem>> -> memref<1x128xf32, #tpu.memory_space<vmem>>
      %146 = tpu.memref_slice %arg7[%0] : memref<2x!tpu.dma_semaphore, #tpu.memory_space<semaphore_mem>> -> memref<1x!tpu.dma_semaphore, #tpu.memory_space<semaphore_mem>>
      %147 = tpu.memref_squeeze %146 : memref<1x!tpu.dma_semaphore, #tpu.memory_space<semaphore_mem>> -> memref<!tpu.dma_semaphore, #tpu.memory_space<semaphore_mem>>
      tpu.enqueue_dma source(%142 : memref<1x128xf32, #tpu.memory_space<any>>) target(%145 : memref<1x128xf32, #tpu.memory_space<vmem>>) target_semaphore(%147 : memref<!tpu.dma_semaphore, #tpu.memory_space<semaphore_mem>>)
      %c11_i32 = arith.constant 11 : i32
      %148 = arith.addi %3, %c11_i32 : i32
      %149 = arith.index_cast %148 : i32 to index
      %150 = memref.load %arg2[%149] : memref<32xi32, #tpu.memory_space<smem>>
      %c0_i32_93 = arith.constant 0 : i32
      %c999_i32_94 = arith.constant 999 : i32
      %151 = arith.maxsi %c0_i32_93, %150 : i32
      %152 = arith.minsi %c999_i32_94, %151 : i32
      %c0_i32_95 = arith.constant 0 : i32
      %153 = tpu.memref_slice %arg3[%152, %c0_i32_95] : memref<1000x128xf32, #tpu.memory_space<any>> -> memref<1x128xf32, #tpu.memory_space<any>>
      %c0_i32_96 = arith.constant 0 : i32
      %c0_i32_97 = arith.constant 0 : i32
      %154 = tpu.memref_slice %arg6[%0, %c0_i32_96, %c0_i32_97] : memref<2x16x128xf32, #tpu.memory_space<vmem>> -> memref<1x16x128xf32, #tpu.memory_space<vmem>>
      %155 = tpu.memref_squeeze %154 : memref<1x16x128xf32, #tpu.memory_space<vmem>> -> memref<16x128xf32, #tpu.memory_space<vmem>>
      %c11_i32_98 = arith.constant 11 : i32
      %c0_i32_99 = arith.constant 0 : i32
      %156 = tpu.memref_slice %155[%c11_i32_98, %c0_i32_99] : memref<16x128xf32, #tpu.memory_space<vmem>> -> memref<1x128xf32, #tpu.memory_space<vmem>>
      %157 = tpu.memref_slice %arg7[%0] : memref<2x!tpu.dma_semaphore, #tpu.memory_space<semaphore_mem>> -> memref<1x!tpu.dma_semaphore, #tpu.memory_space<semaphore_mem>>
      %158 = tpu.memref_squeeze %157 : memref<1x!tpu.dma_semaphore, #tpu.memory_space<semaphore_mem>> -> memref<!tpu.dma_semaphore, #tpu.memory_space<semaphore_mem>>
      tpu.enqueue_dma source(%153 : memref<1x128xf32, #tpu.memory_space<any>>) target(%156 : memref<1x128xf32, #tpu.memory_space<vmem>>) target_semaphore(%158 : memref<!tpu.dma_semaphore, #tpu.memory_space<semaphore_mem>>)
      %c12_i32 = arith.constant 12 : i32
      %159 = arith.addi %3, %c12_i32 : i32
      %160 = arith.index_cast %159 : i32 to index
      %161 = memref.load %arg2[%160] : memref<32xi32, #tpu.memory_space<smem>>
      %c0_i32_100 = arith.constant 0 : i32
      %c999_i32_101 = arith.constant 999 : i32
      %162 = arith.maxsi %c0_i32_100, %161 : i32
      %163 = arith.minsi %c999_i32_101, %162 : i32
      %c0_i32_102 = arith.constant 0 : i32
      %164 = tpu.memref_slice %arg3[%163, %c0_i32_102] : memref<1000x128xf32, #tpu.memory_space<any>> -> memref<1x128xf32, #tpu.memory_space<any>>
      %c0_i32_103 = arith.constant 0 : i32
      %c0_i32_104 = arith.constant 0 : i32
      %165 = tpu.memref_slice %arg6[%0, %c0_i32_103, %c0_i32_104] : memref<2x16x128xf32, #tpu.memory_space<vmem>> -> memref<1x16x128xf32, #tpu.memory_space<vmem>>
      %166 = tpu.memref_squeeze %165 : memref<1x16x128xf32, #tpu.memory_space<vmem>> -> memref<16x128xf32, #tpu.memory_space<vmem>>
      %c12_i32_105 = arith.constant 12 : i32
      %c0_i32_106 = arith.constant 0 : i32
      %167 = tpu.memref_slice %166[%c12_i32_105, %c0_i32_106] : memref<16x128xf32, #tpu.memory_space<vmem>> -> memref<1x128xf32, #tpu.memory_space<vmem>>
      %168 = tpu.memref_slice %arg7[%0] : memref<2x!tpu.dma_semaphore, #tpu.memory_space<semaphore_mem>> -> memref<1x!tpu.dma_semaphore, #tpu.memory_space<semaphore_mem>>
      %169 = tpu.memref_squeeze %168 : memref<1x!tpu.dma_semaphore, #tpu.memory_space<semaphore_mem>> -> memref<!tpu.dma_semaphore, #tpu.memory_space<semaphore_mem>>
      tpu.enqueue_dma source(%164 : memref<1x128xf32, #tpu.memory_space<any>>) target(%167 : memref<1x128xf32, #tpu.memory_space<vmem>>) target_semaphore(%169 : memref<!tpu.dma_semaphore, #tpu.memory_space<semaphore_mem>>)
      %c13_i32 = arith.constant 13 : i32
      %170 = arith.addi %3, %c13_i32 : i32
      %171 = arith.index_cast %170 : i32 to index
      %172 = memref.load %arg2[%171] : memref<32xi32, #tpu.memory_space<smem>>
      %c0_i32_107 = arith.constant 0 : i32
      %c999_i32_108 = arith.constant 999 : i32
      %173 = arith.maxsi %c0_i32_107, %172 : i32
      %174 = arith.minsi %c999_i32_108, %173 : i32
      %c0_i32_109 = arith.constant 0 : i32
      %175 = tpu.memref_slice %arg3[%174, %c0_i32_109] : memref<1000x128xf32, #tpu.memory_space<any>> -> memref<1x128xf32, #tpu.memory_space<any>>
      %c0_i32_110 = arith.constant 0 : i32
      %c0_i32_111 = arith.constant 0 : i32
      %176 = tpu.memref_slice %arg6[%0, %c0_i32_110, %c0_i32_111] : memref<2x16x128xf32, #tpu.memory_space<vmem>> -> memref<1x16x128xf32, #tpu.memory_space<vmem>>
      %177 = tpu.memref_squeeze %176 : memref<1x16x128xf32, #tpu.memory_space<vmem>> -> memref<16x128xf32, #tpu.memory_space<vmem>>
      %c13_i32_112 = arith.constant 13 : i32
      %c0_i32_113 = arith.constant 0 : i32
      %178 = tpu.memref_slice %177[%c13_i32_112, %c0_i32_113] : memref<16x128xf32, #tpu.memory_space<vmem>> -> memref<1x128xf32, #tpu.memory_space<vmem>>
      %179 = tpu.memref_slice %arg7[%0] : memref<2x!tpu.dma_semaphore, #tpu.memory_space<semaphore_mem>> -> memref<1x!tpu.dma_semaphore, #tpu.memory_space<semaphore_mem>>
      %180 = tpu.memref_squeeze %179 : memref<1x!tpu.dma_semaphore, #tpu.memory_space<semaphore_mem>> -> memref<!tpu.dma_semaphore, #tpu.memory_space<semaphore_mem>>
      tpu.enqueue_dma source(%175 : memref<1x128xf32, #tpu.memory_space<any>>) target(%178 : memref<1x128xf32, #tpu.memory_space<vmem>>) target_semaphore(%180 : memref<!tpu.dma_semaphore, #tpu.memory_space<semaphore_mem>>)
      %c14_i32 = arith.constant 14 : i32
      %181 = arith.addi %3, %c14_i32 : i32
      %182 = arith.index_cast %181 : i32 to index
      %183 = memref.load %arg2[%182] : memref<32xi32, #tpu.memory_space<smem>>
      %c0_i32_114 = arith.constant 0 : i32
      %c999_i32_115 = arith.constant 999 : i32
      %184 = arith.maxsi %c0_i32_114, %183 : i32
      %185 = arith.minsi %c999_i32_115, %184 : i32
      %c0_i32_116 = arith.constant 0 : i32
      %186 = tpu.memref_slice %arg3[%185, %c0_i32_116] : memref<1000x128xf32, #tpu.memory_space<any>> -> memref<1x128xf32, #tpu.memory_space<any>>
      %c0_i32_117 = arith.constant 0 : i32
      %c0_i32_118 = arith.constant 0 : i32
      %187 = tpu.memref_slice %arg6[%0, %c0_i32_117, %c0_i32_118] : memref<2x16x128xf32, #tpu.memory_space<vmem>> -> memref<1x16x128xf32, #tpu.memory_space<vmem>>
      %188 = tpu.memref_squeeze %187 : memref<1x16x128xf32, #tpu.memory_space<vmem>> -> memref<16x128xf32, #tpu.memory_space<vmem>>
      %c14_i32_119 = arith.constant 14 : i32
      %c0_i32_120 = arith.constant 0 : i32
      %189 = tpu.memref_slice %188[%c14_i32_119, %c0_i32_120] : memref<16x128xf32, #tpu.memory_space<vmem>> -> memref<1x128xf32, #tpu.memory_space<vmem>>
      %190 = tpu.memref_slice %arg7[%0] : memref<2x!tpu.dma_semaphore, #tpu.memory_space<semaphore_mem>> -> memref<1x!tpu.dma_semaphore, #tpu.memory_space<semaphore_mem>>
      %191 = tpu.memref_squeeze %190 : memref<1x!tpu.dma_semaphore, #tpu.memory_space<semaphore_mem>> -> memref<!tpu.dma_semaphore, #tpu.memory_space<semaphore_mem>>
      tpu.enqueue_dma source(%186 : memref<1x128xf32, #tpu.memory_space<any>>) target(%189 : memref<1x128xf32, #tpu.memory_space<vmem>>) target_semaphore(%191 : memref<!tpu.dma_semaphore, #tpu.memory_space<semaphore_mem>>)
      %c15_i32 = arith.constant 15 : i32
      %192 = arith.addi %3, %c15_i32 : i32
      %193 = arith.index_cast %192 : i32 to index
      %194 = memref.load %arg2[%193] : memref<32xi32, #tpu.memory_space<smem>>
      %c0_i32_121 = arith.constant 0 : i32
      %c999_i32_122 = arith.constant 999 : i32
      %195 = arith.maxsi %c0_i32_121, %194 : i32
      %196 = arith.minsi %c999_i32_122, %195 : i32
      %c0_i32_123 = arith.constant 0 : i32
      %197 = tpu.memref_slice %arg3[%196, %c0_i32_123] : memref<1000x128xf32, #tpu.memory_space<any>> -> memref<1x128xf32, #tpu.memory_space<any>>
      %c0_i32_124 = arith.constant 0 : i32
      %c0_i32_125 = arith.constant 0 : i32
      %198 = tpu.memref_slice %arg6[%0, %c0_i32_124, %c0_i32_125] : memref<2x16x128xf32, #tpu.memory_space<vmem>> -> memref<1x16x128xf32, #tpu.memory_space<vmem>>
      %199 = tpu.memref_squeeze %198 : memref<1x16x128xf32, #tpu.memory_space<vmem>> -> memref<16x128xf32, #tpu.memory_space<vmem>>
      %c15_i32_126 = arith.constant 15 : i32
      %c0_i32_127 = arith.constant 0 : i32
      %200 = tpu.memref_slice %199[%c15_i32_126, %c0_i32_127] : memref<16x128xf32, #tpu.memory_space<vmem>> -> memref<1x128xf32, #tpu.memory_space<vmem>>
      %201 = tpu.memref_slice %arg7[%0] : memref<2x!tpu.dma_semaphore, #tpu.memory_space<semaphore_mem>> -> memref<1x!tpu.dma_semaphore, #tpu.memory_space<semaphore_mem>>
      %202 = tpu.memref_squeeze %201 : memref<1x!tpu.dma_semaphore, #tpu.memory_space<semaphore_mem>> -> memref<!tpu.dma_semaphore, #tpu.memory_space<semaphore_mem>>
      tpu.enqueue_dma source(%197 : memref<1x128xf32, #tpu.memory_space<any>>) target(%200 : memref<1x128xf32, #tpu.memory_space<vmem>>) target_semaphore(%202 : memref<!tpu.dma_semaphore, #tpu.memory_space<semaphore_mem>>)
    } else {
    }
    %c1_i32 = arith.constant 1 : i32
    %7 = arith.addi %arg1, %c1_i32 : i32
    %c1_i32_2 = arith.constant 1 : i32
    %8 = arith.cmpi slt, %7, %c1_i32_2 : i32
    %9 = arith.extui %8 : i1 to i32
    %c0_i32_3 = arith.constant 0 : i32
    %10 = arith.cmpi ne, %9, %c0_i32_3 : i32
    scf.if %10 {
      %c1_i32_14 = arith.constant 1 : i32
      %27 = arith.subi %c1_i32_14, %0 : i32
      %c1_i32_15 = arith.constant 1 : i32
      %28 = arith.subi %c1_i32_15, %0 : i32
      %c16_i32_16 = arith.constant 16 : i32
      %29 = arith.addi %3, %c16_i32_16 : i32
      %c0_i32_17 = arith.constant 0 : i32
      %30 = arith.addi %29, %c0_i32_17 : i32
      %31 = arith.index_cast %30 : i32 to index
      %32 = memref.load %arg2[%31] : memref<32xi32, #tpu.memory_space<smem>>
      %c0_i32_18 = arith.constant 0 : i32
      %c999_i32 = arith.constant 999 : i32
      %33 = arith.maxsi %c0_i32_18, %32 : i32
      %34 = arith.minsi %c999_i32, %33 : i32
      %c0_i32_19 = arith.constant 0 : i32
      %35 = tpu.memref_slice %arg3[%34, %c0_i32_19] : memref<1000x128xf32, #tpu.memory_space<any>> -> memref<1x128xf32, #tpu.memory_space<any>>
      %c0_i32_20 = arith.constant 0 : i32
      %c0_i32_21 = arith.constant 0 : i32
      %36 = tpu.memref_slice %arg6[%27, %c0_i32_20, %c0_i32_21] : memref<2x16x128xf32, #tpu.memory_space<vmem>> -> memref<1x16x128xf32, #tpu.memory_space<vmem>>
      %37 = tpu.memref_squeeze %36 : memref<1x16x128xf32, #tpu.memory_space<vmem>> -> memref<16x128xf32, #tpu.memory_space<vmem>>
      %c0_i32_22 = arith.constant 0 : i32
      %c0_i32_23 = arith.constant 0 : i32
      %38 = tpu.memref_slice %37[%c0_i32_22, %c0_i32_23] : memref<16x128xf32, #tpu.memory_space<vmem>> -> memref<1x128xf32, #tpu.memory_space<vmem>>
      %39 = tpu.memref_slice %arg7[%28] : memref<2x!tpu.dma_semaphore, #tpu.memory_space<semaphore_mem>> -> memref<1x!tpu.dma_semaphore, #tpu.memory_space<semaphore_mem>>
      %40 = tpu.memref_squeeze %39 : memref<1x!tpu.dma_semaphore, #tpu.memory_space<semaphore_mem>> -> memref<!tpu.dma_semaphore, #tpu.memory_space<semaphore_mem>>
      tpu.enqueue_dma source(%35 : memref<1x128xf32, #tpu.memory_space<any>>) target(%38 : memref<1x128xf32, #tpu.memory_space<vmem>>) target_semaphore(%40 : memref<!tpu.dma_semaphore, #tpu.memory_space<semaphore_mem>>)
      %c1_i32_24 = arith.constant 1 : i32
      %41 = arith.addi %29, %c1_i32_24 : i32
      %42 = arith.index_cast %41 : i32 to index
      %43 = memref.load %arg2[%42] : memref<32xi32, #tpu.memory_space<smem>>
      %c0_i32_25 = arith.constant 0 : i32
      %c999_i32_26 = arith.constant 999 : i32
      %44 = arith.maxsi %c0_i32_25, %43 : i32
      %45 = arith.minsi %c999_i32_26, %44 : i32
      %c0_i32_27 = arith.constant 0 : i32
      %46 = tpu.memref_slice %arg3[%45, %c0_i32_27] : memref<1000x128xf32, #tpu.memory_space<any>> -> memref<1x128xf32, #tpu.memory_space<any>>
      %c0_i32_28 = arith.constant 0 : i32
      %c0_i32_29 = arith.constant 0 : i32
      %47 = tpu.memref_slice %arg6[%27, %c0_i32_28, %c0_i32_29] : memref<2x16x128xf32, #tpu.memory_space<vmem>> -> memref<1x16x128xf32, #tpu.memory_space<vmem>>
      %48 = tpu.memref_squeeze %47 : memref<1x16x128xf32, #tpu.memory_space<vmem>> -> memref<16x128xf32, #tpu.memory_space<vmem>>
      %c1_i32_30 = arith.constant 1 : i32
      %c0_i32_31 = arith.constant 0 : i32
      %49 = tpu.memref_slice %48[%c1_i32_30, %c0_i32_31] : memref<16x128xf32, #tpu.memory_space<vmem>> -> memref<1x128xf32, #tpu.memory_space<vmem>>
      %50 = tpu.memref_slice %arg7[%28] : memref<2x!tpu.dma_semaphore, #tpu.memory_space<semaphore_mem>> -> memref<1x!tpu.dma_semaphore, #tpu.memory_space<semaphore_mem>>
      %51 = tpu.memref_squeeze %50 : memref<1x!tpu.dma_semaphore, #tpu.memory_space<semaphore_mem>> -> memref<!tpu.dma_semaphore, #tpu.memory_space<semaphore_mem>>
      tpu.enqueue_dma source(%46 : memref<1x128xf32, #tpu.memory_space<any>>) target(%49 : memref<1x128xf32, #tpu.memory_space<vmem>>) target_semaphore(%51 : memref<!tpu.dma_semaphore, #tpu.memory_space<semaphore_mem>>)
      %c2_i32_32 = arith.constant 2 : i32
      %52 = arith.addi %29, %c2_i32_32 : i32
      %53 = arith.index_cast %52 : i32 to index
      %54 = memref.load %arg2[%53] : memref<32xi32, #tpu.memory_space<smem>>
      %c0_i32_33 = arith.constant 0 : i32
      %c999_i32_34 = arith.constant 999 : i32
      %55 = arith.maxsi %c0_i32_33, %54 : i32
      %56 = arith.minsi %c999_i32_34, %55 : i32
      %c0_i32_35 = arith.constant 0 : i32
      %57 = tpu.memref_slice %arg3[%56, %c0_i32_35] : memref<1000x128xf32, #tpu.memory_space<any>> -> memref<1x128xf32, #tpu.memory_space<any>>
      %c0_i32_36 = arith.constant 0 : i32
      %c0_i32_37 = arith.constant 0 : i32
      %58 = tpu.memref_slice %arg6[%27, %c0_i32_36, %c0_i32_37] : memref<2x16x128xf32, #tpu.memory_space<vmem>> -> memref<1x16x128xf32, #tpu.memory_space<vmem>>
      %59 = tpu.memref_squeeze %58 : memref<1x16x128xf32, #tpu.memory_space<vmem>> -> memref<16x128xf32, #tpu.memory_space<vmem>>
      %c2_i32_38 = arith.constant 2 : i32
      %c0_i32_39 = arith.constant 0 : i32
      %60 = tpu.memref_slice %59[%c2_i32_38, %c0_i32_39] : memref<16x128xf32, #tpu.memory_space<vmem>> -> memref<1x128xf32, #tpu.memory_space<vmem>>
      %61 = tpu.memref_slice %arg7[%28] : memref<2x!tpu.dma_semaphore, #tpu.memory_space<semaphore_mem>> -> memref<1x!tpu.dma_semaphore, #tpu.memory_space<semaphore_mem>>
      %62 = tpu.memref_squeeze %61 : memref<1x!tpu.dma_semaphore, #tpu.memory_space<semaphore_mem>> -> memref<!tpu.dma_semaphore, #tpu.memory_space<semaphore_mem>>
      tpu.enqueue_dma source(%57 : memref<1x128xf32, #tpu.memory_space<any>>) target(%60 : memref<1x128xf32, #tpu.memory_space<vmem>>) target_semaphore(%62 : memref<!tpu.dma_semaphore, #tpu.memory_space<semaphore_mem>>)
      %c3_i32 = arith.constant 3 : i32
      %63 = arith.addi %29, %c3_i32 : i32
      %64 = arith.index_cast %63 : i32 to index
      %65 = memref.load %arg2[%64] : memref<32xi32, #tpu.memory_space<smem>>
      %c0_i32_40 = arith.constant 0 : i32
      %c999_i32_41 = arith.constant 999 : i32
      %66 = arith.maxsi %c0_i32_40, %65 : i32
      %67 = arith.minsi %c999_i32_41, %66 : i32
      %c0_i32_42 = arith.constant 0 : i32
      %68 = tpu.memref_slice %arg3[%67, %c0_i32_42] : memref<1000x128xf32, #tpu.memory_space<any>> -> memref<1x128xf32, #tpu.memory_space<any>>
      %c0_i32_43 = arith.constant 0 : i32
      %c0_i32_44 = arith.constant 0 : i32
      %69 = tpu.memref_slice %arg6[%27, %c0_i32_43, %c0_i32_44] : memref<2x16x128xf32, #tpu.memory_space<vmem>> -> memref<1x16x128xf32, #tpu.memory_space<vmem>>
      %70 = tpu.memref_squeeze %69 : memref<1x16x128xf32, #tpu.memory_space<vmem>> -> memref<16x128xf32, #tpu.memory_space<vmem>>
      %c3_i32_45 = arith.constant 3 : i32
      %c0_i32_46 = arith.constant 0 : i32
      %71 = tpu.memref_slice %70[%c3_i32_45, %c0_i32_46] : memref<16x128xf32, #tpu.memory_space<vmem>> -> memref<1x128xf32, #tpu.memory_space<vmem>>
      %72 = tpu.memref_slice %arg7[%28] : memref<2x!tpu.dma_semaphore, #tpu.memory_space<semaphore_mem>> -> memref<1x!tpu.dma_semaphore, #tpu.memory_space<semaphore_mem>>
      %73 = tpu.memref_squeeze %72 : memref<1x!tpu.dma_semaphore, #tpu.memory_space<semaphore_mem>> -> memref<!tpu.dma_semaphore, #tpu.memory_space<semaphore_mem>>
      tpu.enqueue_dma source(%68 : memref<1x128xf32, #tpu.memory_space<any>>) target(%71 : memref<1x128xf32, #tpu.memory_space<vmem>>) target_semaphore(%73 : memref<!tpu.dma_semaphore, #tpu.memory_space<semaphore_mem>>)
      %c4_i32 = arith.constant 4 : i32
      %74 = arith.addi %29, %c4_i32 : i32
      %75 = arith.index_cast %74 : i32 to index
      %76 = memref.load %arg2[%75] : memref<32xi32, #tpu.memory_space<smem>>
      %c0_i32_47 = arith.constant 0 : i32
      %c999_i32_48 = arith.constant 999 : i32
      %77 = arith.maxsi %c0_i32_47, %76 : i32
      %78 = arith.minsi %c999_i32_48, %77 : i32
      %c0_i32_49 = arith.constant 0 : i32
      %79 = tpu.memref_slice %arg3[%78, %c0_i32_49] : memref<1000x128xf32, #tpu.memory_space<any>> -> memref<1x128xf32, #tpu.memory_space<any>>
      %c0_i32_50 = arith.constant 0 : i32
      %c0_i32_51 = arith.constant 0 : i32
      %80 = tpu.memref_slice %arg6[%27, %c0_i32_50, %c0_i32_51] : memref<2x16x128xf32, #tpu.memory_space<vmem>> -> memref<1x16x128xf32, #tpu.memory_space<vmem>>
      %81 = tpu.memref_squeeze %80 : memref<1x16x128xf32, #tpu.memory_space<vmem>> -> memref<16x128xf32, #tpu.memory_space<vmem>>
      %c4_i32_52 = arith.constant 4 : i32
      %c0_i32_53 = arith.constant 0 : i32
      %82 = tpu.memref_slice %81[%c4_i32_52, %c0_i32_53] : memref<16x128xf32, #tpu.memory_space<vmem>> -> memref<1x128xf32, #tpu.memory_space<vmem>>
      %83 = tpu.memref_slice %arg7[%28] : memref<2x!tpu.dma_semaphore, #tpu.memory_space<semaphore_mem>> -> memref<1x!tpu.dma_semaphore, #tpu.memory_space<semaphore_mem>>
      %84 = tpu.memref_squeeze %83 : memref<1x!tpu.dma_semaphore, #tpu.memory_space<semaphore_mem>> -> memref<!tpu.dma_semaphore, #tpu.memory_space<semaphore_mem>>
      tpu.enqueue_dma source(%79 : memref<1x128xf32, #tpu.memory_space<any>>) target(%82 : memref<1x128xf32, #tpu.memory_space<vmem>>) target_semaphore(%84 : memref<!tpu.dma_semaphore, #tpu.memory_space<semaphore_mem>>)
      %c5_i32 = arith.constant 5 : i32
      %85 = arith.addi %29, %c5_i32 : i32
      %86 = arith.index_cast %85 : i32 to index
      %87 = memref.load %arg2[%86] : memref<32xi32, #tpu.memory_space<smem>>
      %c0_i32_54 = arith.constant 0 : i32
      %c999_i32_55 = arith.constant 999 : i32
      %88 = arith.maxsi %c0_i32_54, %87 : i32
      %89 = arith.minsi %c999_i32_55, %88 : i32
      %c0_i32_56 = arith.constant 0 : i32
      %90 = tpu.memref_slice %arg3[%89, %c0_i32_56] : memref<1000x128xf32, #tpu.memory_space<any>> -> memref<1x128xf32, #tpu.memory_space<any>>
      %c0_i32_57 = arith.constant 0 : i32
      %c0_i32_58 = arith.constant 0 : i32
      %91 = tpu.memref_slice %arg6[%27, %c0_i32_57, %c0_i32_58] : memref<2x16x128xf32, #tpu.memory_space<vmem>> -> memref<1x16x128xf32, #tpu.memory_space<vmem>>
      %92 = tpu.memref_squeeze %91 : memref<1x16x128xf32, #tpu.memory_space<vmem>> -> memref<16x128xf32, #tpu.memory_space<vmem>>
      %c5_i32_59 = arith.constant 5 : i32
      %c0_i32_60 = arith.constant 0 : i32
      %93 = tpu.memref_slice %92[%c5_i32_59, %c0_i32_60] : memref<16x128xf32, #tpu.memory_space<vmem>> -> memref<1x128xf32, #tpu.memory_space<vmem>>
      %94 = tpu.memref_slice %arg7[%28] : memref<2x!tpu.dma_semaphore, #tpu.memory_space<semaphore_mem>> -> memref<1x!tpu.dma_semaphore, #tpu.memory_space<semaphore_mem>>
      %95 = tpu.memref_squeeze %94 : memref<1x!tpu.dma_semaphore, #tpu.memory_space<semaphore_mem>> -> memref<!tpu.dma_semaphore, #tpu.memory_space<semaphore_mem>>
      tpu.enqueue_dma source(%90 : memref<1x128xf32, #tpu.memory_space<any>>) target(%93 : memref<1x128xf32, #tpu.memory_space<vmem>>) target_semaphore(%95 : memref<!tpu.dma_semaphore, #tpu.memory_space<semaphore_mem>>)
      %c6_i32 = arith.constant 6 : i32
      %96 = arith.addi %29, %c6_i32 : i32
      %97 = arith.index_cast %96 : i32 to index
      %98 = memref.load %arg2[%97] : memref<32xi32, #tpu.memory_space<smem>>
      %c0_i32_61 = arith.constant 0 : i32
      %c999_i32_62 = arith.constant 999 : i32
      %99 = arith.maxsi %c0_i32_61, %98 : i32
      %100 = arith.minsi %c999_i32_62, %99 : i32
      %c0_i32_63 = arith.constant 0 : i32
      %101 = tpu.memref_slice %arg3[%100, %c0_i32_63] : memref<1000x128xf32, #tpu.memory_space<any>> -> memref<1x128xf32, #tpu.memory_space<any>>
      %c0_i32_64 = arith.constant 0 : i32
      %c0_i32_65 = arith.constant 0 : i32
      %102 = tpu.memref_slice %arg6[%27, %c0_i32_64, %c0_i32_65] : memref<2x16x128xf32, #tpu.memory_space<vmem>> -> memref<1x16x128xf32, #tpu.memory_space<vmem>>
      %103 = tpu.memref_squeeze %102 : memref<1x16x128xf32, #tpu.memory_space<vmem>> -> memref<16x128xf32, #tpu.memory_space<vmem>>
      %c6_i32_66 = arith.constant 6 : i32
      %c0_i32_67 = arith.constant 0 : i32
      %104 = tpu.memref_slice %103[%c6_i32_66, %c0_i32_67] : memref<16x128xf32, #tpu.memory_space<vmem>> -> memref<1x128xf32, #tpu.memory_space<vmem>>
      %105 = tpu.memref_slice %arg7[%28] : memref<2x!tpu.dma_semaphore, #tpu.memory_space<semaphore_mem>> -> memref<1x!tpu.dma_semaphore, #tpu.memory_space<semaphore_mem>>
      %106 = tpu.memref_squeeze %105 : memref<1x!tpu.dma_semaphore, #tpu.memory_space<semaphore_mem>> -> memref<!tpu.dma_semaphore, #tpu.memory_space<semaphore_mem>>
      tpu.enqueue_dma source(%101 : memref<1x128xf32, #tpu.memory_space<any>>) target(%104 : memref<1x128xf32, #tpu.memory_space<vmem>>) target_semaphore(%106 : memref<!tpu.dma_semaphore, #tpu.memory_space<semaphore_mem>>)
      %c7_i32 = arith.constant 7 : i32
      %107 = arith.addi %29, %c7_i32 : i32
      %108 = arith.index_cast %107 : i32 to index
      %109 = memref.load %arg2[%108] : memref<32xi32, #tpu.memory_space<smem>>
      %c0_i32_68 = arith.constant 0 : i32
      %c999_i32_69 = arith.constant 999 : i32
      %110 = arith.maxsi %c0_i32_68, %109 : i32
      %111 = arith.minsi %c999_i32_69, %110 : i32
      %c0_i32_70 = arith.constant 0 : i32
      %112 = tpu.memref_slice %arg3[%111, %c0_i32_70] : memref<1000x128xf32, #tpu.memory_space<any>> -> memref<1x128xf32, #tpu.memory_space<any>>
      %c0_i32_71 = arith.constant 0 : i32
      %c0_i32_72 = arith.constant 0 : i32
      %113 = tpu.memref_slice %arg6[%27, %c0_i32_71, %c0_i32_72] : memref<2x16x128xf32, #tpu.memory_space<vmem>> -> memref<1x16x128xf32, #tpu.memory_space<vmem>>
      %114 = tpu.memref_squeeze %113 : memref<1x16x128xf32, #tpu.memory_space<vmem>> -> memref<16x128xf32, #tpu.memory_space<vmem>>
      %c7_i32_73 = arith.constant 7 : i32
      %c0_i32_74 = arith.constant 0 : i32
      %115 = tpu.memref_slice %114[%c7_i32_73, %c0_i32_74] : memref<16x128xf32, #tpu.memory_space<vmem>> -> memref<1x128xf32, #tpu.memory_space<vmem>>
      %116 = tpu.memref_slice %arg7[%28] : memref<2x!tpu.dma_semaphore, #tpu.memory_space<semaphore_mem>> -> memref<1x!tpu.dma_semaphore, #tpu.memory_space<semaphore_mem>>
      %117 = tpu.memref_squeeze %116 : memref<1x!tpu.dma_semaphore, #tpu.memory_space<semaphore_mem>> -> memref<!tpu.dma_semaphore, #tpu.memory_space<semaphore_mem>>
      tpu.enqueue_dma source(%112 : memref<1x128xf32, #tpu.memory_space<any>>) target(%115 : memref<1x128xf32, #tpu.memory_space<vmem>>) target_semaphore(%117 : memref<!tpu.dma_semaphore, #tpu.memory_space<semaphore_mem>>)
      %c8_i32 = arith.constant 8 : i32
      %118 = arith.addi %29, %c8_i32 : i32
      %119 = arith.index_cast %118 : i32 to index
      %120 = memref.load %arg2[%119] : memref<32xi32, #tpu.memory_space<smem>>
      %c0_i32_75 = arith.constant 0 : i32
      %c999_i32_76 = arith.constant 999 : i32
      %121 = arith.maxsi %c0_i32_75, %120 : i32
      %122 = arith.minsi %c999_i32_76, %121 : i32
      %c0_i32_77 = arith.constant 0 : i32
      %123 = tpu.memref_slice %arg3[%122, %c0_i32_77] : memref<1000x128xf32, #tpu.memory_space<any>> -> memref<1x128xf32, #tpu.memory_space<any>>
      %c0_i32_78 = arith.constant 0 : i32
      %c0_i32_79 = arith.constant 0 : i32
      %124 = tpu.memref_slice %arg6[%27, %c0_i32_78, %c0_i32_79] : memref<2x16x128xf32, #tpu.memory_space<vmem>> -> memref<1x16x128xf32, #tpu.memory_space<vmem>>
      %125 = tpu.memref_squeeze %124 : memref<1x16x128xf32, #tpu.memory_space<vmem>> -> memref<16x128xf32, #tpu.memory_space<vmem>>
      %c8_i32_80 = arith.constant 8 : i32
      %c0_i32_81 = arith.constant 0 : i32
      %126 = tpu.memref_slice %125[%c8_i32_80, %c0_i32_81] : memref<16x128xf32, #tpu.memory_space<vmem>> -> memref<1x128xf32, #tpu.memory_space<vmem>>
      %127 = tpu.memref_slice %arg7[%28] : memref<2x!tpu.dma_semaphore, #tpu.memory_space<semaphore_mem>> -> memref<1x!tpu.dma_semaphore, #tpu.memory_space<semaphore_mem>>
      %128 = tpu.memref_squeeze %127 : memref<1x!tpu.dma_semaphore, #tpu.memory_space<semaphore_mem>> -> memref<!tpu.dma_semaphore, #tpu.memory_space<semaphore_mem>>
      tpu.enqueue_dma source(%123 : memref<1x128xf32, #tpu.memory_space<any>>) target(%126 : memref<1x128xf32, #tpu.memory_space<vmem>>) target_semaphore(%128 : memref<!tpu.dma_semaphore, #tpu.memory_space<semaphore_mem>>)
      %c9_i32 = arith.constant 9 : i32
      %129 = arith.addi %29, %c9_i32 : i32
      %130 = arith.index_cast %129 : i32 to index
      %131 = memref.load %arg2[%130] : memref<32xi32, #tpu.memory_space<smem>>
      %c0_i32_82 = arith.constant 0 : i32
      %c999_i32_83 = arith.constant 999 : i32
      %132 = arith.maxsi %c0_i32_82, %131 : i32
      %133 = arith.minsi %c999_i32_83, %132 : i32
      %c0_i32_84 = arith.constant 0 : i32
      %134 = tpu.memref_slice %arg3[%133, %c0_i32_84] : memref<1000x128xf32, #tpu.memory_space<any>> -> memref<1x128xf32, #tpu.memory_space<any>>
      %c0_i32_85 = arith.constant 0 : i32
      %c0_i32_86 = arith.constant 0 : i32
      %135 = tpu.memref_slice %arg6[%27, %c0_i32_85, %c0_i32_86] : memref<2x16x128xf32, #tpu.memory_space<vmem>> -> memref<1x16x128xf32, #tpu.memory_space<vmem>>
      %136 = tpu.memref_squeeze %135 : memref<1x16x128xf32, #tpu.memory_space<vmem>> -> memref<16x128xf32, #tpu.memory_space<vmem>>
      %c9_i32_87 = arith.constant 9 : i32
      %c0_i32_88 = arith.constant 0 : i32
      %137 = tpu.memref_slice %136[%c9_i32_87, %c0_i32_88] : memref<16x128xf32, #tpu.memory_space<vmem>> -> memref<1x128xf32, #tpu.memory_space<vmem>>
      %138 = tpu.memref_slice %arg7[%28] : memref<2x!tpu.dma_semaphore, #tpu.memory_space<semaphore_mem>> -> memref<1x!tpu.dma_semaphore, #tpu.memory_space<semaphore_mem>>
      %139 = tpu.memref_squeeze %138 : memref<1x!tpu.dma_semaphore, #tpu.memory_space<semaphore_mem>> -> memref<!tpu.dma_semaphore, #tpu.memory_space<semaphore_mem>>
      tpu.enqueue_dma source(%134 : memref<1x128xf32, #tpu.memory_space<any>>) target(%137 : memref<1x128xf32, #tpu.memory_space<vmem>>) target_semaphore(%139 : memref<!tpu.dma_semaphore, #tpu.memory_space<semaphore_mem>>)
      %c10_i32 = arith.constant 10 : i32
      %140 = arith.addi %29, %c10_i32 : i32
      %141 = arith.index_cast %140 : i32 to index
      %142 = memref.load %arg2[%141] : memref<32xi32, #tpu.memory_space<smem>>
      %c0_i32_89 = arith.constant 0 : i32
      %c999_i32_90 = arith.constant 999 : i32
      %143 = arith.maxsi %c0_i32_89, %142 : i32
      %144 = arith.minsi %c999_i32_90, %143 : i32
      %c0_i32_91 = arith.constant 0 : i32
      %145 = tpu.memref_slice %arg3[%144, %c0_i32_91] : memref<1000x128xf32, #tpu.memory_space<any>> -> memref<1x128xf32, #tpu.memory_space<any>>
      %c0_i32_92 = arith.constant 0 : i32
      %c0_i32_93 = arith.constant 0 : i32
      %146 = tpu.memref_slice %arg6[%27, %c0_i32_92, %c0_i32_93] : memref<2x16x128xf32, #tpu.memory_space<vmem>> -> memref<1x16x128xf32, #tpu.memory_space<vmem>>
      %147 = tpu.memref_squeeze %146 : memref<1x16x128xf32, #tpu.memory_space<vmem>> -> memref<16x128xf32, #tpu.memory_space<vmem>>
      %c10_i32_94 = arith.constant 10 : i32
      %c0_i32_95 = arith.constant 0 : i32
      %148 = tpu.memref_slice %147[%c10_i32_94, %c0_i32_95] : memref<16x128xf32, #tpu.memory_space<vmem>> -> memref<1x128xf32, #tpu.memory_space<vmem>>
      %149 = tpu.memref_slice %arg7[%28] : memref<2x!tpu.dma_semaphore, #tpu.memory_space<semaphore_mem>> -> memref<1x!tpu.dma_semaphore, #tpu.memory_space<semaphore_mem>>
      %150 = tpu.memref_squeeze %149 : memref<1x!tpu.dma_semaphore, #tpu.memory_space<semaphore_mem>> -> memref<!tpu.dma_semaphore, #tpu.memory_space<semaphore_mem>>
      tpu.enqueue_dma source(%145 : memref<1x128xf32, #tpu.memory_space<any>>) target(%148 : memref<1x128xf32, #tpu.memory_space<vmem>>) target_semaphore(%150 : memref<!tpu.dma_semaphore, #tpu.memory_space<semaphore_mem>>)
      %c11_i32 = arith.constant 11 : i32
      %151 = arith.addi %29, %c11_i32 : i32
      %152 = arith.index_cast %151 : i32 to index
      %153 = memref.load %arg2[%152] : memref<32xi32, #tpu.memory_space<smem>>
      %c0_i32_96 = arith.constant 0 : i32
      %c999_i32_97 = arith.constant 999 : i32
      %154 = arith.maxsi %c0_i32_96, %153 : i32
      %155 = arith.minsi %c999_i32_97, %154 : i32
      %c0_i32_98 = arith.constant 0 : i32
      %156 = tpu.memref_slice %arg3[%155, %c0_i32_98] : memref<1000x128xf32, #tpu.memory_space<any>> -> memref<1x128xf32, #tpu.memory_space<any>>
      %c0_i32_99 = arith.constant 0 : i32
      %c0_i32_100 = arith.constant 0 : i32
      %157 = tpu.memref_slice %arg6[%27, %c0_i32_99, %c0_i32_100] : memref<2x16x128xf32, #tpu.memory_space<vmem>> -> memref<1x16x128xf32, #tpu.memory_space<vmem>>
      %158 = tpu.memref_squeeze %157 : memref<1x16x128xf32, #tpu.memory_space<vmem>> -> memref<16x128xf32, #tpu.memory_space<vmem>>
      %c11_i32_101 = arith.constant 11 : i32
      %c0_i32_102 = arith.constant 0 : i32
      %159 = tpu.memref_slice %158[%c11_i32_101, %c0_i32_102] : memref<16x128xf32, #tpu.memory_space<vmem>> -> memref<1x128xf32, #tpu.memory_space<vmem>>
      %160 = tpu.memref_slice %arg7[%28] : memref<2x!tpu.dma_semaphore, #tpu.memory_space<semaphore_mem>> -> memref<1x!tpu.dma_semaphore, #tpu.memory_space<semaphore_mem>>
      %161 = tpu.memref_squeeze %160 : memref<1x!tpu.dma_semaphore, #tpu.memory_space<semaphore_mem>> -> memref<!tpu.dma_semaphore, #tpu.memory_space<semaphore_mem>>
      tpu.enqueue_dma source(%156 : memref<1x128xf32, #tpu.memory_space<any>>) target(%159 : memref<1x128xf32, #tpu.memory_space<vmem>>) target_semaphore(%161 : memref<!tpu.dma_semaphore, #tpu.memory_space<semaphore_mem>>)
      %c12_i32 = arith.constant 12 : i32
      %162 = arith.addi %29, %c12_i32 : i32
      %163 = arith.index_cast %162 : i32 to index
      %164 = memref.load %arg2[%163] : memref<32xi32, #tpu.memory_space<smem>>
      %c0_i32_103 = arith.constant 0 : i32
      %c999_i32_104 = arith.constant 999 : i32
      %165 = arith.maxsi %c0_i32_103, %164 : i32
      %166 = arith.minsi %c999_i32_104, %165 : i32
      %c0_i32_105 = arith.constant 0 : i32
      %167 = tpu.memref_slice %arg3[%166, %c0_i32_105] : memref<1000x128xf32, #tpu.memory_space<any>> -> memref<1x128xf32, #tpu.memory_space<any>>
      %c0_i32_106 = arith.constant 0 : i32
      %c0_i32_107 = arith.constant 0 : i32
      %168 = tpu.memref_slice %arg6[%27, %c0_i32_106, %c0_i32_107] : memref<2x16x128xf32, #tpu.memory_space<vmem>> -> memref<1x16x128xf32, #tpu.memory_space<vmem>>
      %169 = tpu.memref_squeeze %168 : memref<1x16x128xf32, #tpu.memory_space<vmem>> -> memref<16x128xf32, #tpu.memory_space<vmem>>
      %c12_i32_108 = arith.constant 12 : i32
      %c0_i32_109 = arith.constant 0 : i32
      %170 = tpu.memref_slice %169[%c12_i32_108, %c0_i32_109] : memref<16x128xf32, #tpu.memory_space<vmem>> -> memref<1x128xf32, #tpu.memory_space<vmem>>
      %171 = tpu.memref_slice %arg7[%28] : memref<2x!tpu.dma_semaphore, #tpu.memory_space<semaphore_mem>> -> memref<1x!tpu.dma_semaphore, #tpu.memory_space<semaphore_mem>>
      %172 = tpu.memref_squeeze %171 : memref<1x!tpu.dma_semaphore, #tpu.memory_space<semaphore_mem>> -> memref<!tpu.dma_semaphore, #tpu.memory_space<semaphore_mem>>
      tpu.enqueue_dma source(%167 : memref<1x128xf32, #tpu.memory_space<any>>) target(%170 : memref<1x128xf32, #tpu.memory_space<vmem>>) target_semaphore(%172 : memref<!tpu.dma_semaphore, #tpu.memory_space<semaphore_mem>>)
      %c13_i32 = arith.constant 13 : i32
      %173 = arith.addi %29, %c13_i32 : i32
      %174 = arith.index_cast %173 : i32 to index
      %175 = memref.load %arg2[%174] : memref<32xi32, #tpu.memory_space<smem>>
      %c0_i32_110 = arith.constant 0 : i32
      %c999_i32_111 = arith.constant 999 : i32
      %176 = arith.maxsi %c0_i32_110, %175 : i32
      %177 = arith.minsi %c999_i32_111, %176 : i32
      %c0_i32_112 = arith.constant 0 : i32
      %178 = tpu.memref_slice %arg3[%177, %c0_i32_112] : memref<1000x128xf32, #tpu.memory_space<any>> -> memref<1x128xf32, #tpu.memory_space<any>>
      %c0_i32_113 = arith.constant 0 : i32
      %c0_i32_114 = arith.constant 0 : i32
      %179 = tpu.memref_slice %arg6[%27, %c0_i32_113, %c0_i32_114] : memref<2x16x128xf32, #tpu.memory_space<vmem>> -> memref<1x16x128xf32, #tpu.memory_space<vmem>>
      %180 = tpu.memref_squeeze %179 : memref<1x16x128xf32, #tpu.memory_space<vmem>> -> memref<16x128xf32, #tpu.memory_space<vmem>>
      %c13_i32_115 = arith.constant 13 : i32
      %c0_i32_116 = arith.constant 0 : i32
      %181 = tpu.memref_slice %180[%c13_i32_115, %c0_i32_116] : memref<16x128xf32, #tpu.memory_space<vmem>> -> memref<1x128xf32, #tpu.memory_space<vmem>>
      %182 = tpu.memref_slice %arg7[%28] : memref<2x!tpu.dma_semaphore, #tpu.memory_space<semaphore_mem>> -> memref<1x!tpu.dma_semaphore, #tpu.memory_space<semaphore_mem>>
      %183 = tpu.memref_squeeze %182 : memref<1x!tpu.dma_semaphore, #tpu.memory_space<semaphore_mem>> -> memref<!tpu.dma_semaphore, #tpu.memory_space<semaphore_mem>>
      tpu.enqueue_dma source(%178 : memref<1x128xf32, #tpu.memory_space<any>>) target(%181 : memref<1x128xf32, #tpu.memory_space<vmem>>) target_semaphore(%183 : memref<!tpu.dma_semaphore, #tpu.memory_space<semaphore_mem>>)
      %c14_i32 = arith.constant 14 : i32
      %184 = arith.addi %29, %c14_i32 : i32
      %185 = arith.index_cast %184 : i32 to index
      %186 = memref.load %arg2[%185] : memref<32xi32, #tpu.memory_space<smem>>
      %c0_i32_117 = arith.constant 0 : i32
      %c999_i32_118 = arith.constant 999 : i32
      %187 = arith.maxsi %c0_i32_117, %186 : i32
      %188 = arith.minsi %c999_i32_118, %187 : i32
      %c0_i32_119 = arith.constant 0 : i32
      %189 = tpu.memref_slice %arg3[%188, %c0_i32_119] : memref<1000x128xf32, #tpu.memory_space<any>> -> memref<1x128xf32, #tpu.memory_space<any>>
      %c0_i32_120 = arith.constant 0 : i32
      %c0_i32_121 = arith.constant 0 : i32
      %190 = tpu.memref_slice %arg6[%27, %c0_i32_120, %c0_i32_121] : memref<2x16x128xf32, #tpu.memory_space<vmem>> -> memref<1x16x128xf32, #tpu.memory_space<vmem>>
      %191 = tpu.memref_squeeze %190 : memref<1x16x128xf32, #tpu.memory_space<vmem>> -> memref<16x128xf32, #tpu.memory_space<vmem>>
      %c14_i32_122 = arith.constant 14 : i32
      %c0_i32_123 = arith.constant 0 : i32
      %192 = tpu.memref_slice %191[%c14_i32_122, %c0_i32_123] : memref<16x128xf32, #tpu.memory_space<vmem>> -> memref<1x128xf32, #tpu.memory_space<vmem>>
      %193 = tpu.memref_slice %arg7[%28] : memref<2x!tpu.dma_semaphore, #tpu.memory_space<semaphore_mem>> -> memref<1x!tpu.dma_semaphore, #tpu.memory_space<semaphore_mem>>
      %194 = tpu.memref_squeeze %193 : memref<1x!tpu.dma_semaphore, #tpu.memory_space<semaphore_mem>> -> memref<!tpu.dma_semaphore, #tpu.memory_space<semaphore_mem>>
      tpu.enqueue_dma source(%189 : memref<1x128xf32, #tpu.memory_space<any>>) target(%192 : memref<1x128xf32, #tpu.memory_space<vmem>>) target_semaphore(%194 : memref<!tpu.dma_semaphore, #tpu.memory_space<semaphore_mem>>)
      %c15_i32 = arith.constant 15 : i32
      %195 = arith.addi %29, %c15_i32 : i32
      %196 = arith.index_cast %195 : i32 to index
      %197 = memref.load %arg2[%196] : memref<32xi32, #tpu.memory_space<smem>>
      %c0_i32_124 = arith.constant 0 : i32
      %c999_i32_125 = arith.constant 999 : i32
      %198 = arith.maxsi %c0_i32_124, %197 : i32
      %199 = arith.minsi %c999_i32_125, %198 : i32
      %c0_i32_126 = arith.constant 0 : i32
      %200 = tpu.memref_slice %arg3[%199, %c0_i32_126] : memref<1000x128xf32, #tpu.memory_space<any>> -> memref<1x128xf32, #tpu.memory_space<any>>
      %c0_i32_127 = arith.constant 0 : i32
      %c0_i32_128 = arith.constant 0 : i32
      %201 = tpu.memref_slice %arg6[%27, %c0_i32_127, %c0_i32_128] : memref<2x16x128xf32, #tpu.memory_space<vmem>> -> memref<1x16x128xf32, #tpu.memory_space<vmem>>
      %202 = tpu.memref_squeeze %201 : memref<1x16x128xf32, #tpu.memory_space<vmem>> -> memref<16x128xf32, #tpu.memory_space<vmem>>
      %c15_i32_129 = arith.constant 15 : i32
      %c0_i32_130 = arith.constant 0 : i32
      %203 = tpu.memref_slice %202[%c15_i32_129, %c0_i32_130] : memref<16x128xf32, #tpu.memory_space<vmem>> -> memref<1x128xf32, #tpu.memory_space<vmem>>
      %204 = tpu.memref_slice %arg7[%28] : memref<2x!tpu.dma_semaphore, #tpu.memory_space<semaphore_mem>> -> memref<1x!tpu.dma_semaphore, #tpu.memory_space<semaphore_mem>>
      %205 = tpu.memref_squeeze %204 : memref<1x!tpu.dma_semaphore, #tpu.memory_space<semaphore_mem>> -> memref<!tpu.dma_semaphore, #tpu.memory_space<semaphore_mem>>
      tpu.enqueue_dma source(%200 : memref<1x128xf32, #tpu.memory_space<any>>) target(%203 : memref<1x128xf32, #tpu.memory_space<vmem>>) target_semaphore(%205 : memref<!tpu.dma_semaphore, #tpu.memory_space<semaphore_mem>>)
    } else {
    }
    %c0_i32_4 = arith.constant 0 : i32
    %c0_i32_5 = arith.constant 0 : i32
    %11 = tpu.memref_slice %arg6[%0, %c0_i32_4, %c0_i32_5] : memref<2x16x128xf32, #tpu.memory_space<vmem>> -> memref<1x16x128xf32, #tpu.memory_space<vmem>>
    %12 = tpu.memref_squeeze %11 : memref<1x16x128xf32, #tpu.memory_space<vmem>> -> memref<16x128xf32, #tpu.memory_space<vmem>>
    %c0_i32_6 = arith.constant 0 : i32
    %c0_i32_7 = arith.constant 0 : i32
    %13 = tpu.memref_slice %arg6[%0, %c0_i32_6, %c0_i32_7] : memref<2x16x128xf32, #tpu.memory_space<vmem>> -> memref<1x16x128xf32, #tpu.memory_space<vmem>>
    %14 = tpu.memref_squeeze %13 : memref<1x16x128xf32, #tpu.memory_space<vmem>> -> memref<16x128xf32, #tpu.memory_space<vmem>>
    %15 = tpu.memref_slice %arg7[%0] : memref<2x!tpu.dma_semaphore, #tpu.memory_space<semaphore_mem>> -> memref<1x!tpu.dma_semaphore, #tpu.memory_space<semaphore_mem>>
    %16 = tpu.memref_squeeze %15 : memref<1x!tpu.dma_semaphore, #tpu.memory_space<semaphore_mem>> -> memref<!tpu.dma_semaphore, #tpu.memory_space<semaphore_mem>>
    tpu.wait_dma2 semaphore(%16 : memref<!tpu.dma_semaphore, #tpu.memory_space<semaphore_mem>>) src(%12 : memref<16x128xf32, #tpu.memory_space<vmem>>) dst(%14 : memref<16x128xf32, #tpu.memory_space<vmem>>)
    %17 = arith.index_cast %0 : i32 to index
    %c0 = arith.constant 0 : index
    %c0_8 = arith.constant 0 : index
    %18 = vector.load %arg6[%17, %c0, %c0_8] : memref<2x16x128xf32, #tpu.memory_space<vmem>>, vector<1x16x128xf32>
    %19 = vector.shape_cast %18 : vector<1x16x128xf32> to vector<16x128xf32>
    %cst = arith.constant 11.3137083 : f32
    %20 = vector.broadcast %cst : f32 to vector<16x128xf32>
    %21 = arith.mulf %19, %20 : vector<16x128xf32>
    %c0_9 = arith.constant 0 : index
    %c0_10 = arith.constant 0 : index
    %22 = vector.load %arg4[%c0_9, %c0_10] : memref<16x128xf32, #tpu.memory_space<vmem>>, vector<16x128xf32>
    %23 = arith.addf %21, %22 : vector<16x128xf32>
    %c0_11 = arith.constant 0 : index
    %c0_12 = arith.constant 0 : index
    %c0_13 = arith.constant 0 : index
    %24 = vector.load %arg5[%c0_11, %c0_12, %c0_13] : memref<1x16x128xf32, #tpu.memory_space<vmem>>, vector<1x16x128xf32>
    %25 = vector.shape_cast %24 : vector<1x16x128xf32> to vector<16x128xf32>
    %26 = vector.shape_cast %23 : vector<16x128xf32> to vector<1x16x128xf32>
    tpu.vector_store %arg5[%c0_11, %c0_12, %c0_13], %26 {strides = array<i32>} : memref<1x16x128xf32, #tpu.memory_space<vmem>>, vector<1x16x128xf32>,
    return
  }
  func.func @transform_1(%arg0: i32, %arg1: i32, %arg2: memref<32xi32, #tpu.memory_space<smem>>) -> (i32, i32) {
    %c0_i32 = arith.constant 0 : i32
    %c0_i32_0 = arith.constant 0 : i32
    return %arg1, %c0_i32 : i32, i32
  }
  func.func @transform_2(%arg0: i32, %arg1: i32, %arg2: memref<32xi32, #tpu.memory_space<smem>>) -> (i32, i32, i32) {
    %c0_i32 = arith.constant 0 : i32
    %c0_i32_0 = arith.constant 0 : i32
    return %arg0, %arg1, %c0_i32 : i32, i32, i32
  }
}

</mosaic_0001>

<bundles_post_ra>
// kernel: tpu_custom_call.1
= control target key start
LH: loop header
LB: loop body
LE: loop exit
PB: predicated region body
PF: predicated region fallthrough
CT: control target
= control target key end

     0   :  { %s1844_s15 = smov [#allocation5]   ;;  %s2221_s0 = inlined_call_operand.hbm [shape: s32[32], index: 0, kind: input, shape index: {}]   ;;  %s2222_s1 = inlined_call_operand.hbm [shape: f32[1000,128], index: 1, kind: input, shape index: {}]   ;;  %s2223_s2 = inlined_call_operand.hbm [shape: f32[16,128], index: 2, kind: input, shape index: {}]   ;;  %s2224_s3 = inlined_call_operand.hbm [shape: f32[2,16,128], index: 3, kind: output, shape index: {}]  }
   0x1   :  { %2228 = sst [smem:[#allocation80_spill]] %s2223_s2  ;;  %s9_s14 = sshll.u32 %s2221_s0, 4  ;;  %s10_s14 = int_to_ptr.hbm [resolvable:$true] %s9_s14 }
   0x2   :  { %12 = dma.hbm_to_smem %s10_s14, 16, %s1844_s15, [#allocation4] }
   0x3   :  { %1808 = dma.done.wait [#allocation4], 16 }
   0x4   :  { %1809 = vsyncadd [#allocation4], 4294967280 }
   0x5   :  { %15 = sfence }
   0x6   :  { %16 = vsyncpa [#allocation7], 0 }
   0x7   :  { %17 = vsyncpa [#allocation8], 0 }
   0x8   :  { %19 = vsyncpa [#allocation8 + $0x1], 0  ;;  %s1874_s16 = smov 0   ;;  %s1876_s17 = smov 0  }
   0x9   :  { %s1878_s18 = smov 0   ;;  %s1880_s19 = smov 0  }
   0xa   :  { %s1882_s20 = smov 0   ;;  %s1884_s0 = smov 0  }
   0xb LB: > { %s1003_s21 = sadd.s32 4294967295, %s1842_s0   ;;  %s1004_s22 = sadd.s32 4294967294, %s1842_s0   ;;  %s1842_s0 = sphi %s1884_s0, %s25_s0   ;;  %s1838_s20 = sphi %s1882_s20, %s2238_s20   ;;  %s1834_s19 = sphi %s1880_s19, %s2237_s19   ;;  %s1830_s18 = sphi %s1878_s18, %s2236_s18   ;;  %s1826_s17 = sphi %s1876_s17, %s2235_s17   ;;  %s1822_s16 = sphi %s1874_s16, %s2234_s16  }
   0xc   : > { %s37_s23 = sadd.s32 1, %s1838_s20  ;;  %s72_s24 = sadd.s32 1, %s1830_s18 }
   0xd   : > { %p39_p0 = scmp.ge.s32.totalorder %s37_s23, 2  ;;  %p82_p1 = scmp.ne.s32.totalorder %s1830_s18, %s1826_s17 }
   0xe   : > { %p83_p2 = scmp.eq.s32.totalorder %s1003_s21, 1  ;;  %p88_p3 = scmp.ne.s32.totalorder %s1826_s17, %s1822_s16 }
   0xf   : > { %s2240_s23 = smov (%p39_p0, %s37_s23), 0  ;;  %p89_p5 = scmp.eq.s32.totalorder %s1004_s22, 1 }
  0x10   : > { %p1914_p4 = por %p83_p2, %p82_p1  ;;  %s67_s26 = ssub.s32 %s1838_s20, %s2240_s23 }
  0x11   : > { %p1005_p6 = scmp.ge.s32.totalorder %s1842_s0, 1  ;;  %p70_p7 = scmp.eq.s32.totalorder %s67_s26, 0 }
  0x12   : > { %p1921_p8 = por %p89_p5, %p88_p3  ;;  %p96_p9 = scmp.lt.s32.totalorder %s1842_s0, 3 }
  0x13   : > { %s1927_s28 = scalar_select %p70_p7, %s1830_s18, %s72_s24  }
  0x14   : > { %p97_p10 = pnand %p1005_p6, %p96_p9  ;;  %p1272_p11 = scmp.eq.s32.totalorder %s1003_s21, 0 }
  0x15   : > { %s2231_s2 = sld [smem:[#allocation80_spill]]  ;;  %s1845_s5 = smov [#allocation6]  }
  0x16   : > { %p1264_p12 = pneg %p97_p10  ;;  %s112_s6 = sshll.u32 %s1845_s5, 4  ;;  %s113_s6 = int_to_ptr.vmem [resolvable:$true] %s112_s6 }
  0x17   : > { %s1846_s7 = smov 128   ;;  %s1847_s8 = smov 8  }
  0x18   : > { %p1265_p13 = pnand %p1272_p11, %p1264_p12  ;;  %128 = sbr.rel (%p97_p10) target bundleno = 303 (0x12f), region = 24 }
  0x1b   : > { %s110_s4 = sshll.u32 %s2231_s2, 4  ;;  %s111_s4 = int_to_ptr.hbm [resolvable:$true] %s110_s4 }
  0x1c   : > { %1267 = dma.hbm_to_vmem [thread:$0]  (!%p1265_p13), %s111_s4, 256, %s113_s6, [#allocation7], %s1846_s7, %s1846_s7, %s1847_s8  }
  0x1d   : > { %1811 = dma.done.wait (%p1272_p11), [#allocation7], 256  }
  0x1e   : > { %1813 = vsyncadd (%p1272_p11), [#allocation7], 4294967040  ;;  %s2225_s9 = sand.u32 1, %s1826_s17   ;;  %s1934_s10 = sshll.u32 %s1834_s19, 4 }
  0x1f   : > { %s1938_s11 = sshll.u32 %s2225_s9, 4  ;;  %s159_s12 = sld [smem:[#allocation5 + %s1934_s10]] }
  0x20   : > { %s181_s13 = sadd.s32 1, %s1934_s10  ;;  %s2226_s14 = smov [#allocation2]  }
  0x21   : > { %s1943_s15 = sshll.u32 %s2226_s14, 4  ;;  %s1945_s21 = sld [smem:[#allocation5 + %s181_s13]]  ;;  %s178_s15 = int_to_ptr.vmem [resolvable:$true] %s1943_s15 }
  0x22   : > { %s188_s19 = scalar_lea.vmem %s2226_s14, 1  ;;  %s202_s22 = sadd.s32 2, %s1934_s10 }
  0x23   : > { %s198_s24 = sshll.u32 %s188_s19, 4  ;;  %s1949_s26 = sld [smem:[#allocation5 + %s202_s22]]  ;;  %s1952_s24 = int_to_ptr.vmem [resolvable:$true] %s198_s24 }
  0x24   : > { %s1956_s29 = scalar_lea.vmem %s2226_s14, 2  ;;  %s1968_s9 = scalar_lea.hbm %s2222_s1, 1000 }
  0x25   : > { %p160_p0 = scmp.gt.s32.totalorder %s159_s12, 0  ;;  %p1011_p1 = scmp.lt.s32.totalorder %s159_s12, 999 }
  0x27   : > { %s2242_s12 = smov (!%p160_p0, %s159_s12), 0  ;;  %p183_p2 = scmp.gt.s32.totalorder %s1945_s21, 0 }
  0x28   : > { %s2244_s12 = smov (!%p1011_p1, %s2242_s12), 999  ;;  %p1016_p3 = scmp.lt.s32.totalorder %s1945_s21, 999 }
  0x29   : > { %s184_s30 = scalar_select %p183_p2, %s1945_s21, 0 }
  0x2a   : > { %s164_s6 = scalar_lea.hbm %s2222_s1, %s2244_s12  ;;  %p204_p5 = scmp.gt.s32.totalorder %s1949_s26, 0 }
  0x2b   : > { %s175_s7 = sshll.u32 %s164_s6, 4  ;;  %p1021_p6 = scmp.lt.s32.totalorder %s1949_s26, 999  ;;  %s176_s7 = int_to_ptr.hbm [resolvable:$true] %s175_s7 }
  0x2c   : > { %s1372_s8 = sshra.s32 %s176_s7, 4  ;;  %s1373_s8 = int_to_ptr.hbm [resolvable:$true] %s1372_s8 }
  0x2d   : > { %s1374_s13 = scalar_lea.hbm %s1373_s8, 1  ;;  %p1377_p9 = scmp.lt.s32.totalorder %s1373_s8, %s2222_s1 }
  0x2e   : > { %p1375_p7 = scmp.ne.s32.totalorder %s1373_s8, %s1374_s13  ;;  %p1378_p10 = scmp.lt.s32.totalorder %s1968_s9, %s1374_s13 }
  0x30   : > { %p1379_p11 = por %p1378_p10, %p1377_p9 }
  0x32   : > { %p1380_p12 = pnand %p1379_p11, %p1375_p7 }
  0x34   : > { %1383 = shalt.err (!%p1380_p12)  }
  0x35   : > { %180 = dma.hbm_to_vmem [thread:$0]  %s176_s7, 16, %s178_s15, [#allocation3] }
  0x36   : > { %s2246_s30 = smov (!%p1016_p3, %s184_s30), 999  ;;  %s219_s14 = sshll.u32 %s1956_s29, 4  ;;  %s220_s14 = int_to_ptr.vmem [resolvable:$true] %s219_s14 }
  0x37   : > { %s205_s12 = scalar_select %p204_p5, %s1949_s26, 0 }
  0x38   : > { %s187_s2 = scalar_lea.hbm %s2222_s1, %s2246_s30  ;;  %s223_s8 = sadd.s32 3, %s1934_s10 }
  0x39   : > { %s196_s6 = sshll.u32 %s187_s2, 4  ;;  %s1984_s13 = sld [smem:[#allocation5 + %s223_s8]]  ;;  %s197_s6 = int_to_ptr.hbm [resolvable:$true] %s196_s6 }
  0x3a   : > { %s1396_s15 = sshra.s32 %s197_s6, 4  ;;  %s1397_s15 = int_to_ptr.hbm [resolvable:$true] %s1396_s15 }
  0x3b   : > { %s1398_s21 = scalar_lea.hbm %s1397_s15, 1  ;;  %p1401_p0 = scmp.lt.s32.totalorder %s1397_s15, %s2222_s1 }
  0x3c   : > { %p1399_p13 = scmp.ne.s32.totalorder %s1397_s15, %s1398_s21  ;;  %p1402_p1 = scmp.lt.s32.totalorder %s1968_s9, %s1398_s21 }
  0x3e   : > { %p1403_p2 = por %p1402_p1, %p1401_p0 }
  0x40   : > { %p1404_p3 = pnand %p1403_p2, %p1399_p13 }
  0x42   : > { %1407 = shalt.err (!%p1404_p3)  }
  0x43   : > { %201 = dma.hbm_to_vmem [thread:$0]  %s197_s6, 16, %s1952_s24, [#allocation3] }
  0x44   : > { %s2248_s12 = smov (!%p1021_p6, %s205_s12), 999  ;;  %s2232_s29 = smov [#allocation2]  }
  0x45   : > { %s230_s30 = scalar_lea.vmem %s2232_s29, 3  ;;  %s208_s5 = scalar_lea.hbm %s2222_s1, %s2248_s12 }
  0x46   : > { %s244_s2 = sadd.s32 4, %s1934_s10  ;;  %s217_s8 = sshll.u32 %s208_s5, 4  ;;  %s218_s8 = int_to_ptr.hbm [resolvable:$true] %s217_s8 }
  0x47   : > { %s240_s15 = sshll.u32 %s230_s30, 4  ;;  %p225_p5 = scmp.gt.s32.totalorder %s1984_s13, 0  ;;  %s241_s15 = int_to_ptr.vmem [resolvable:$true] %s240_s15 }
  0x48   : > { %s1420_s21 = sshra.s32 %s218_s8, 4  ;;  %s1421_s21 = int_to_ptr.hbm [resolvable:$true] %s1420_s21 }
  0x49   : > { %s1422_s7 = scalar_lea.hbm %s1421_s21, 1  ;;  %p1425_p6 = scmp.lt.s32.totalorder %s1421_s21, %s2222_s1 }
  0x4a   : > { %p1423_p7 = scmp.ne.s32.totalorder %s1421_s21, %s1422_s7  ;;  %p1426_p9 = scmp.lt.s32.totalorder %s1968_s9, %s1422_s7 }
  0x4c   : > { %p1427_p10 = por %p1426_p9, %p1425_p6 }
  0x4e   : > { %p1428_p11 = pnand %p1427_p10, %p1423_p7 }
  0x50   : > { %1431 = shalt.err (!%p1428_p11)  }
  0x51   : > { %222 = dma.hbm_to_vmem [thread:$0]  %s218_s8, 16, %s220_s14, [#allocation3] }
  0x52   : > { %s226_s26 = scalar_select %p225_p5, %s1984_s13, 0 }
  0x53   : > { %p1026_p12 = scmp.lt.s32.totalorder %s1984_s13, 999  ;;  %s245_s12 = sld [smem:[#allocation5 + %s244_s2]] }
  0x54   : > { %s251_s6 = scalar_lea.vmem %s2232_s29, 4  ;;  %s265_s30 = sadd.s32 5, %s1934_s10 }
  0x55   : > { %s2250_s26 = smov (!%p1026_p12, %s226_s26), 999  ;;  %s261_s22 = sshll.u32 %s251_s6, 4  ;;  %s2012_s22 = int_to_ptr.vmem [resolvable:$true] %s261_s22 }
  0x56   : > { %s2007_s4 = sld [smem:[#allocation5 + %s265_s30]]  ;;  %s229_s7 = scalar_lea.hbm %s2222_s1, %s2250_s26 }
  0x57   : > { %s238_s14 = sshll.u32 %s229_s7, 4  ;;  %s239_s14 = int_to_ptr.hbm [resolvable:$true] %s238_s14 }
  0x58   : > { %s1444_s13 = sshra.s32 %s239_s14, 4  ;;  %s1445_s13 = int_to_ptr.hbm [resolvable:$true] %s1444_s13 }
  0x59   : > { %p246_p13 = scmp.gt.s32.totalorder %s245_s12, 0  ;;  %s1446_s2 = scalar_lea.hbm %s1445_s13, 1 }
  0x5a   : > { %p1447_p0 = scmp.ne.s32.totalorder %s1445_s13, %s1446_s2  ;;  %p1449_p1 = scmp.lt.s32.totalorder %s1445_s13, %s2222_s1 }
  0x5b   : > { %p1450_p2 = scmp.lt.s32.totalorder %s1968_s9, %s1446_s2 }
  0x5d   : > { %p1451_p3 = por %p1450_p2, %p1449_p1 }
  0x5f   : > { %p1452_p5 = pnand %p1451_p3, %p1447_p0 }
  0x61   : > { %1455 = shalt.err (!%p1452_p5)  }
  0x62   : > { %243 = dma.hbm_to_vmem [thread:$0]  %s239_s14, 16, %s241_s15, [#allocation3] }
  0x63   : > { %s247_s24 = scalar_select %p246_p13, %s245_s12, 0 }
  0x64   : > { %p1031_p7 = scmp.lt.s32.totalorder %s245_s12, 999  ;;  %p267_p6 = scmp.gt.s32.totalorder %s2007_s4, 0 }
  0x65   : > { %p1036_p9 = scmp.lt.s32.totalorder %s2007_s4, 999  ;;  %s272_s26 = scalar_lea.vmem %s2232_s29, 5 }
  0x66   : > { %s2252_s24 = smov (!%p1031_p7, %s247_s24), 999  ;;  %s282_s7 = sshll.u32 %s272_s26, 4  ;;  %s283_s7 = int_to_ptr.vmem [resolvable:$true] %s282_s7 }
  0x67   : > { %s268_s6 = scalar_select %p267_p6, %s2007_s4, 0 }
  0x68   : > { %s250_s21 = scalar_lea.hbm %s2222_s1, %s2252_s24  ;;  %s286_s15 = sadd.s32 6, %s1934_s10 }
  0x69   : > { %s259_s13 = sshll.u32 %s250_s21, 4  ;;  %s2026_s14 = sld [smem:[#allocation5 + %s286_s15]]  ;;  %s260_s13 = int_to_ptr.hbm [resolvable:$true] %s259_s13 }
  0x6a   : > { %s1468_s2 = sshra.s32 %s260_s13, 4  ;;  %s1469_s2 = int_to_ptr.hbm [resolvable:$true] %s1468_s2 }
  0x6b   : > { %s1470_s12 = scalar_lea.hbm %s1469_s2, 1  ;;  %p1473_p11 = scmp.lt.s32.totalorder %s1469_s2, %s2222_s1 }
  0x6c   : > { %p1471_p10 = scmp.ne.s32.totalorder %s1469_s2, %s1470_s12  ;;  %p1474_p12 = scmp.lt.s32.totalorder %s1968_s9, %s1470_s12 }
  0x6e   : > { %p1475_p13 = por %p1474_p12, %p1473_p11 }
  0x70   : > { %p1476_p0 = pnand %p1475_p13, %p1471_p10 }
  0x72   : > { %1479 = shalt.err (!%p1476_p0)  }
  0x73   : > { %264 = dma.hbm_to_vmem [thread:$0]  %s260_s13, 16, %s2012_s22, [#allocation3] }
  0x74   : > { %s2254_s6 = smov (!%p1036_p9, %s268_s6), 999  ;;  %s293_s24 = scalar_lea.vmem %s2232_s29, 6 }
  0x75   : > { %s271_s5 = scalar_lea.hbm %s2222_s1, %s2254_s6  ;;  %s307_s21 = sadd.s32 7, %s1934_s10 }
  0x76   : > { %s280_s15 = sshll.u32 %s271_s5, 4  ;;  %s303_s2 = sshll.u32 %s293_s24, 4  ;;  %s281_s15 = int_to_ptr.hbm [resolvable:$true] %s280_s15  ;;  %s304_s2 = int_to_ptr.vmem [resolvable:$true] %s303_s2 }
  0x77   : > { %p288_p1 = scmp.gt.s32.totalorder %s2026_s14, 0  ;;  %s1492_s12 = sshra.s32 %s281_s15, 4  ;;  %s1493_s12 = int_to_ptr.hbm [resolvable:$true] %s1492_s12 }
  0x78   : > { %s1494_s8 = scalar_lea.hbm %s1493_s12, 1  ;;  %p1497_p3 = scmp.lt.s32.totalorder %s1493_s12, %s2222_s1 }
  0x79   : > { %p1495_p2 = scmp.ne.s32.totalorder %s1493_s12, %s1494_s8  ;;  %p1498_p5 = scmp.lt.s32.totalorder %s1968_s9, %s1494_s8 }
  0x7b   : > { %p1499_p7 = por %p1498_p5, %p1497_p3 }
  0x7d   : > { %p1500_p6 = pnand %p1499_p7, %p1495_p2 }
  0x7f   : > { %1503 = shalt.err (!%p1500_p6)  }
  0x80   : > { %285 = dma.hbm_to_vmem [thread:$0]  %s281_s15, 16, %s283_s7, [#allocation3] }
  0x81   : > { %s289_s4 = scalar_select %p288_p1, %s2026_s14, 0 }
  0x82   : > { %p1041_p9 = scmp.lt.s32.totalorder %s2026_s14, 999  ;;  %s308_s6 = sld [smem:[#allocation5 + %s307_s21]] }
  0x83   : > { %s314_s13 = scalar_lea.vmem %s2232_s29, 7  ;;  %s328_s24 = sadd.s32 8, %s1934_s10 }
  0x84   : > { %s2256_s4 = smov (!%p1041_p9, %s289_s4), 999  ;;  %s324_s26 = sshll.u32 %s314_s13, 4  ;;  %s2054_s26 = int_to_ptr.vmem [resolvable:$true] %s324_s26 }
  0x85   : > { %s2049_s30 = sld [smem:[#allocation5 + %s328_s24]]  ;;  %s292_s8 = scalar_lea.hbm %s2222_s1, %s2256_s4 }
  0x86   : > { %s301_s7 = sshll.u32 %s292_s8, 4  ;;  %s302_s7 = int_to_ptr.hbm [resolvable:$true] %s301_s7 }
  0x87   : > { %s1516_s14 = sshra.s32 %s302_s7, 4  ;;  %s1517_s14 = int_to_ptr.hbm [resolvable:$true] %s1516_s14 }
  0x88   : > { %p309_p10 = scmp.gt.s32.totalorder %s308_s6, 0  ;;  %s1518_s21 = scalar_lea.hbm %s1517_s14, 1 }
  0x89   : > { %p1519_p11 = scmp.ne.s32.totalorder %s1517_s14, %s1518_s21  ;;  %p1521_p12 = scmp.lt.s32.totalorder %s1517_s14, %s2222_s1 }
  0x8a   : > { %p1522_p13 = scmp.lt.s32.totalorder %s1968_s9, %s1518_s21 }
  0x8c   : > { %p1523_p0 = por %p1522_p13, %p1521_p12 }
  0x8e   : > { %p1524_p1 = pnand %p1523_p0, %p1519_p11 }
  0x90   : > { %1527 = shalt.err (!%p1524_p1)  }
  0x91   : > { %306 = dma.hbm_to_vmem [thread:$0]  %s302_s7, 16, %s304_s2, [#allocation3] }
  0x92   : > { %s310_s22 = scalar_select %p309_p10, %s308_s6, 0 }
  0x93   : > { %p1046_p2 = scmp.lt.s32.totalorder %s308_s6, 999  ;;  %p330_p3 = scmp.gt.s32.totalorder %s2049_s30, 0 }
  0x94   : > { %p1051_p5 = scmp.lt.s32.totalorder %s2049_s30, 999  ;;  %s335_s4 = scalar_lea.vmem %s2232_s29, 8 }
  0x95   : > { %s2258_s22 = smov (!%p1046_p2, %s310_s22), 999  ;;  %s345_s8 = sshll.u32 %s335_s4, 4  ;;  %s346_s8 = int_to_ptr.vmem [resolvable:$true] %s345_s8 }
  0x96   : > { %s331_s13 = scalar_select %p330_p3, %s2049_s30, 0 }
  0x97   : > { %s313_s12 = scalar_lea.hbm %s2222_s1, %s2258_s22  ;;  %s349_s2 = sadd.s32 9, %s1934_s10 }
  0x98   : > { %s322_s14 = sshll.u32 %s313_s12, 4  ;;  %s2068_s7 = sld [smem:[#allocation5 + %s349_s2]]  ;;  %s323_s14 = int_to_ptr.hbm [resolvable:$true] %s322_s14 }
  0x99   : > { %s1540_s21 = sshra.s32 %s323_s14, 4  ;;  %s1541_s21 = int_to_ptr.hbm [resolvable:$true] %s1540_s21 }
  0x9a   : > { %s1542_s6 = scalar_lea.hbm %s1541_s21, 1  ;;  %p1545_p6 = scmp.lt.s32.totalorder %s1541_s21, %s2222_s1 }
  0x9b   : > { %p1543_p7 = scmp.ne.s32.totalorder %s1541_s21, %s1542_s6  ;;  %p1546_p9 = scmp.lt.s32.totalorder %s1968_s9, %s1542_s6 }
  0x9d   : > { %p1547_p10 = por %p1546_p9, %p1545_p6 }
  0x9f   : > { %p1548_p11 = pnand %p1547_p10, %p1543_p7 }
  0xa1   : > { %1551 = shalt.err (!%p1548_p11)  }
  0xa2   : > { %327 = dma.hbm_to_vmem [thread:$0]  %s323_s14, 16, %s2054_s26, [#allocation3] }
  0xa3   : > { %s2260_s13 = smov (!%p1051_p5, %s331_s13), 999  ;;  %s356_s22 = scalar_lea.vmem %s2232_s29, 9 }
  0xa4   : > { %s334_s5 = scalar_lea.hbm %s2222_s1, %s2260_s13  ;;  %s370_s12 = sadd.s32 10, %s1934_s10 }
  0xa5   : > { %s343_s2 = sshll.u32 %s334_s5, 4  ;;  %s366_s21 = sshll.u32 %s356_s22, 4  ;;  %s344_s2 = int_to_ptr.hbm [resolvable:$true] %s343_s2  ;;  %s367_s21 = int_to_ptr.vmem [resolvable:$true] %s366_s21 }
  0xa6   : > { %p351_p12 = scmp.gt.s32.totalorder %s2068_s7, 0  ;;  %s1564_s6 = sshra.s32 %s344_s2, 4  ;;  %s1565_s6 = int_to_ptr.hbm [resolvable:$true] %s1564_s6 }
  0xa7   : > { %s1566_s15 = scalar_lea.hbm %s1565_s6, 1  ;;  %p1569_p0 = scmp.lt.s32.totalorder %s1565_s6, %s2222_s1 }
  0xa8   : > { %p1567_p13 = scmp.ne.s32.totalorder %s1565_s6, %s1566_s15  ;;  %p1570_p1 = scmp.lt.s32.totalorder %s1968_s9, %s1566_s15 }
  0xaa   : > { %p1571_p2 = por %p1570_p1, %p1569_p0 }
  0xac   : > { %p1572_p3 = pnand %p1571_p2, %p1567_p13 }
  0xae   : > { %1575 = shalt.err (!%p1572_p3)  }
  0xaf   : > { %348 = dma.hbm_to_vmem [thread:$0]  %s344_s2, 16, %s346_s8, [#allocation3] }
  0xb0   : > { %s352_s30 = scalar_select %p351_p12, %s2068_s7, 0 }
  0xb1   : > { %p1056_p5 = scmp.lt.s32.totalorder %s2068_s7, 999  ;;  %s371_s13 = sld [smem:[#allocation5 + %s370_s12]] }
  0xb2   : > { %s377_s14 = scalar_lea.vmem %s2232_s29, 10  ;;  %s391_s22 = sadd.s32 11, %s1934_s10 }
  0xb3   : > { %s2262_s30 = smov (!%p1056_p5, %s352_s30), 999  ;;  %s387_s4 = sshll.u32 %s377_s14, 4  ;;  %s2096_s4 = int_to_ptr.vmem [resolvable:$true] %s387_s4 }
  0xb4   : > { %s2091_s24 = sld [smem:[#allocation5 + %s391_s22]]  ;;  %s355_s15 = scalar_lea.hbm %s2222_s1, %s2262_s30 }
  0xb5   : > { %s364_s8 = sshll.u32 %s355_s15, 4  ;;  %s365_s8 = int_to_ptr.hbm [resolvable:$true] %s364_s8 }
  0xb6   : > { %s1588_s7 = sshra.s32 %s365_s8, 4  ;;  %s1589_s7 = int_to_ptr.hbm [resolvable:$true] %s1588_s7 }
  0xb7   : > { %p372_p7 = scmp.gt.s32.totalorder %s371_s13, 0  ;;  %s1590_s12 = scalar_lea.hbm %s1589_s7, 1 }
  0xb8   : > { %p1591_p6 = scmp.ne.s32.totalorder %s1589_s7, %s1590_s12  ;;  %p1593_p9 = scmp.lt.s32.totalorder %s1589_s7, %s2222_s1 }
  0xb9   : > { %p1594_p10 = scmp.lt.s32.totalorder %s1968_s9, %s1590_s12 }
  0xbb   : > { %p1595_p11 = por %p1594_p10, %p1593_p9 }
  0xbd   : > { %p1596_p12 = pnand %p1595_p11, %p1591_p6 }
  0xbf   : > { %1599 = shalt.err (!%p1596_p12)  }
  0xc0   : > { %369 = dma.hbm_to_vmem [thread:$0]  %s365_s8, 16, %s367_s21, [#allocation3] }
  0xc1   : > { %s373_s26 = scalar_select %p372_p7, %s371_s13, 0 }
  0xc2   : > { %p1061_p13 = scmp.lt.s32.totalorder %s371_s13, 999  ;;  %p393_p0 = scmp.gt.s32.totalorder %s2091_s24, 0 }
  0xc3   : > { %p1066_p1 = scmp.lt.s32.totalorder %s2091_s24, 999  ;;  %s398_s30 = scalar_lea.vmem %s2232_s29, 11 }
  0xc4   : > { %s2264_s26 = smov (!%p1061_p13, %s373_s26), 999  ;;  %s408_s15 = sshll.u32 %s398_s30, 4  ;;  %s409_s15 = int_to_ptr.vmem [resolvable:$true] %s408_s15 }
  0xc5   : > { %s394_s14 = scalar_select %p393_p0, %s2091_s24, 0 }
  0xc6   : > { %s376_s6 = scalar_lea.hbm %s2222_s1, %s2264_s26  ;;  %s412_s21 = sadd.s32 12, %s1934_s10 }
  0xc7   : > { %s385_s7 = sshll.u32 %s376_s6, 4  ;;  %s2110_s8 = sld [smem:[#allocation5 + %s412_s21]]  ;;  %s386_s7 = int_to_ptr.hbm [resolvable:$true] %s385_s7 }
  0xc8   : > { %s1612_s12 = sshra.s32 %s386_s7, 4  ;;  %s1613_s12 = int_to_ptr.hbm [resolvable:$true] %s1612_s12 }
  0xc9   : > { %s1614_s13 = scalar_lea.hbm %s1613_s12, 1  ;;  %p1617_p3 = scmp.lt.s32.totalorder %s1613_s12, %s2222_s1 }
  0xca   : > { %p1615_p2 = scmp.ne.s32.totalorder %s1613_s12, %s1614_s13  ;;  %p1618_p5 = scmp.lt.s32.totalorder %s1968_s9, %s1614_s13 }
  0xcc   : > { %p1619_p7 = por %p1618_p5, %p1617_p3 }
  0xce   : > { %p1620_p6 = pnand %p1619_p7, %p1615_p2 }
  0xd0   : > { %1623 = shalt.err (!%p1620_p6)  }
  0xd1   : > { %390 = dma.hbm_to_vmem [thread:$0]  %s386_s7, 16, %s2096_s4, [#allocation3] }
  0xd2   : > { %s2266_s14 = smov (!%p1066_p1, %s394_s14), 999  ;;  %s419_s26 = scalar_lea.vmem %s2232_s29, 12 }
  0xd3   : > { %s397_s5 = scalar_lea.hbm %s2222_s1, %s2266_s14  ;;  %s433_s6 = sadd.s32 13, %s1934_s10 }
  0xd4   : > { %s406_s21 = sshll.u32 %s397_s5, 4  ;;  %s429_s12 = sshll.u32 %s419_s26, 4  ;;  %s407_s21 = int_to_ptr.hbm [resolvable:$true] %s406_s21  ;;  %s430_s12 = int_to_ptr.vmem [resolvable:$true] %s429_s12 }
  0xd5   : > { %p414_p9 = scmp.gt.s32.totalorder %s2110_s8, 0  ;;  %s1636_s13 = sshra.s32 %s407_s21, 4  ;;  %s1637_s13 = int_to_ptr.hbm [resolvable:$true] %s1636_s13 }
  0xd6   : > { %s1638_s2 = scalar_lea.hbm %s1637_s13, 1  ;;  %p1641_p11 = scmp.lt.s32.totalorder %s1637_s13, %s2222_s1 }
  0xd7   : > { %p1639_p10 = scmp.ne.s32.totalorder %s1637_s13, %s1638_s2  ;;  %p1642_p12 = scmp.lt.s32.totalorder %s1968_s9, %s1638_s2 }
  0xd9   : > { %p1643_p13 = por %p1642_p12, %p1641_p11 }
  0xdb   : > { %p1644_p0 = pnand %p1643_p13, %p1639_p10 }
  0xdd   : > { %1647 = shalt.err (!%p1644_p0)  }
  0xde   : > { %411 = dma.hbm_to_vmem [thread:$0]  %s407_s21, 16, %s409_s15, [#allocation3] }
  0xdf   : > { %s415_s24 = scalar_select %p414_p9, %s2110_s8, 0 }
  0xe0   : > { %p1071_p1 = scmp.lt.s32.totalorder %s2110_s8, 999  ;;  %s434_s14 = sld [smem:[#allocation5 + %s433_s6]] }
  0xe1   : > { %s440_s7 = scalar_lea.vmem %s2232_s29, 13  ;;  %s454_s26 = sadd.s32 14, %s1934_s10 }
  0xe2   : > { %s2268_s24 = smov (!%p1071_p1, %s415_s24), 999  ;;  %s450_s30 = sshll.u32 %s440_s7, 4  ;;  %s2138_s30 = int_to_ptr.vmem [resolvable:$true] %s450_s30 }
  0xe3   : > { %s2133_s22 = sld [smem:[#allocation5 + %s454_s26]]  ;;  %s418_s2 = scalar_lea.hbm %s2222_s1, %s2268_s24 }
  0xe4   : > { %s427_s15 = sshll.u32 %s418_s2, 4  ;;  %s428_s15 = int_to_ptr.hbm [resolvable:$true] %s427_s15 }
  0xe5   : > { %s1660_s8 = sshra.s32 %s428_s15, 4  ;;  %s1661_s8 = int_to_ptr.hbm [resolvable:$true] %s1660_s8 }
  0xe6   : > { %p435_p2 = scmp.gt.s32.totalorder %s434_s14, 0  ;;  %s1662_s6 = scalar_lea.hbm %s1661_s8, 1 }
  0xe7   : > { %p1663_p3 = scmp.ne.s32.totalorder %s1661_s8, %s1662_s6  ;;  %p1665_p5 = scmp.lt.s32.totalorder %s1661_s8, %s2222_s1 }
  0xe8   : > { %p1666_p7 = scmp.lt.s32.totalorder %s1968_s9, %s1662_s6 }
  0xea   : > { %p1667_p6 = por %p1666_p7, %p1665_p5 }
  0xec   : > { %p1668_p9 = pnand %p1667_p6, %p1663_p3 }
  0xee   : > { %1671 = shalt.err (!%p1668_p9)  }
  0xef   : > { %432 = dma.hbm_to_vmem [thread:$0]  %s428_s15, 16, %s430_s12, [#allocation3] }
  0xf0   : > { %s436_s4 = scalar_select %p435_p2, %s434_s14, 0 }
  0xf1   : > { %p1076_p10 = scmp.lt.s32.totalorder %s434_s14, 999  ;;  %p456_p11 = scmp.gt.s32.totalorder %s2133_s22, 0 }
  0xf2   : > { %p1081_p12 = scmp.lt.s32.totalorder %s2133_s22, 999  ;;  %s461_s24 = scalar_lea.vmem %s2232_s29, 14 }
  0xf3   : > { %s2270_s4 = smov (!%p1076_p10, %s436_s4), 999  ;;  %s471_s2 = sshll.u32 %s461_s24, 4  ;;  %s472_s2 = int_to_ptr.vmem [resolvable:$true] %s471_s2 }
  0xf4   : > { %s457_s7 = scalar_select %p456_p11, %s2133_s22, 0 }
  0xf5   : > { %s439_s13 = scalar_lea.hbm %s2222_s1, %s2270_s4  ;;  %s475_s12 = sadd.s32 15, %s1934_s10 }
  0xf6   : > { %s448_s8 = sshll.u32 %s439_s13, 4  ;;  %s2152_s15 = sld [smem:[#allocation5 + %s475_s12]]  ;;  %s449_s8 = int_to_ptr.hbm [resolvable:$true] %s448_s8 }
  0xf7   : > { %s1684_s6 = sshra.s32 %s449_s8, 4  ;;  %s1685_s6 = int_to_ptr.hbm [resolvable:$true] %s1684_s6 }
  0xf8   : > { %s1686_s14 = scalar_lea.hbm %s1685_s6, 1  ;;  %p1689_p0 = scmp.lt.s32.totalorder %s1685_s6, %s2222_s1 }
  0xf9   : > { %p1687_p13 = scmp.ne.s32.totalorder %s1685_s6, %s1686_s14  ;;  %p1690_p1 = scmp.lt.s32.totalorder %s1968_s9, %s1686_s14 }
  0xfb   : > { %p1691_p2 = por %p1690_p1, %p1689_p0 }
  0xfd   : > { %p1692_p3 = pnand %p1691_p2, %p1687_p13 }
  0xff   : > { %1695 = shalt.err (!%p1692_p3)  }
 0x100   : > { %453 = dma.hbm_to_vmem [thread:$0]  %s449_s8, 16, %s2138_s30, [#allocation3] }
 0x101   : > { %s2272_s7 = smov (!%p1081_p12, %s457_s7), 999  ;;  %s482_s13 = scalar_lea.vmem %s2232_s29, 15 }
 0x102   : > { %s460_s26 = scalar_lea.hbm %s2222_s1, %s2272_s7  ;;  %p477_p5 = scmp.gt.s32.totalorder %s2152_s15, 0 }
 0x103   : > { %s469_s5 = sshll.u32 %s460_s26, 4  ;;  %s470_s5 = int_to_ptr.hbm [resolvable:$true] %s469_s5 }
 0x104   : > { %s1708_s12 = sshra.s32 %s470_s5, 4  ;;  %s1709_s12 = int_to_ptr.hbm [resolvable:$true] %s1708_s12 }
 0x105   : > { %s1710_s6 = scalar_lea.hbm %s1709_s12, 1  ;;  %p1713_p6 = scmp.lt.s32.totalorder %s1709_s12, %s2222_s1 }
 0x106   : > { %p1711_p7 = scmp.ne.s32.totalorder %s1709_s12, %s1710_s6  ;;  %p1714_p9 = scmp.lt.s32.totalorder %s1968_s9, %s1710_s6 }
 0x108   : > { %p1715_p10 = por %p1714_p9, %p1713_p6 }
 0x10a   : > { %p1716_p11 = pnand %p1715_p10, %p1711_p7 }
 0x10c   : > { %1719 = shalt.err (!%p1716_p11)  }
 0x10d   : > { %474 = dma.hbm_to_vmem [thread:$0]  %s470_s5, 16, %s472_s2, [#allocation3] }
 0x10e   : > { %s478_s30 = scalar_select %p477_p5, %s2152_s15, 0 }
 0x10f   : > { %p1086_p12 = scmp.lt.s32.totalorder %s2152_s15, 999  ;;  %s492_s29 = sshll.u32 %s482_s13, 4  ;;  %s493_s29 = int_to_ptr.vmem [resolvable:$true] %s492_s29 }
 0x111   : > { %s2274_s30 = smov (!%p1086_p12, %s478_s30), 999 }
 0x112   : > { %s481_s8 = scalar_lea.hbm %s2222_s1, %s2274_s30 }
 0x113   : > { %s490_s19 = sshll.u32 %s481_s8, 4  ;;  %s491_s19 = int_to_ptr.hbm [resolvable:$true] %s490_s19 }
 0x114   : > { %s1732_s4 = sshra.s32 %s491_s19, 4  ;;  %s1733_s4 = int_to_ptr.hbm [resolvable:$true] %s1732_s4 }
 0x115   : > { %s1734_s24 = scalar_lea.hbm %s1733_s4, 1  ;;  %p1737_p0 = scmp.lt.s32.totalorder %s1733_s4, %s2222_s1 }
 0x116   : > { %p1735_p13 = scmp.ne.s32.totalorder %s1733_s4, %s1734_s24  ;;  %p1738_p1 = scmp.lt.s32.totalorder %s1968_s9, %s1734_s24 }
 0x118   : > { %p1739_p2 = por %p1738_p1, %p1737_p0 }
 0x11a   : > { %p1740_p3 = pnand %p1739_p2, %p1735_p13 }
 0x11c   : > { %1743 = shalt.err (!%p1740_p3)  }
 0x11d   : > { %495 = dma.hbm_to_vmem [thread:$0]  %s491_s19, 16, %s493_s29, [#allocation3] }
 0x11e   : > { %s143_s15 = scalar_lea.vmem [#allocation9], %s1938_s11 }
 0x11f   : > { %1814 = dma.done.wait [#allocation3], 256 }
 0x120   : > { %1815 = vsyncadd [#allocation3], 4294967040  ;;  %s870_s12 = scalar_lea.hbm %s2224_s3, %s1934_s10  ;;  %v846_v0 = vld [vmem:[#allocation2] sm:$0xff]  ;;  %v847_v2 = vld [vmem:[#allocation2 + $0x8] sm:$0xff]  ;;  %s871_s6 = sshll.u32 %s143_s15, 4  ;;  %s872_s6 = int_to_ptr.vmem [resolvable:$true] %s871_s6 }
 0x121   : > { %v850_v1 = vld [vmem:[#allocation6] sm:$0xff]  ;;  %s2184_s9 = sshll.u32 %s870_s12, 4  ;;  %v848_v3 = vmul.f32 11.313708, %v846_v0  ;;  %v849_v4 = vmul.f32 11.313708, %v847_v2  ;;  %s874_s9 = int_to_ptr.hbm [resolvable:$true] %s2184_s9 }
 0x122   : > { %v851_v5 = vld [vmem:[#allocation6 + $0x8] sm:$0xff]  ;;  %s2233_s11 = sand.u32 1, %s1826_s17   ;;  %s1770_s10 = sshra.s32 %s874_s9, 4  ;;  %s1771_s10 = int_to_ptr.hbm [resolvable:$true] %s1770_s10 }
 0x123   : > { %v852_v6 = vadd.f32 %v850_v1, %v848_v3  ;;  %v853_v7 = vadd.f32 %v851_v5, %v849_v4  ;;  %s857_s14 = scalar_lea.sflag [#allocation8], %s2233_s11  ;;  %s1772_s21 = scalar_lea.hbm %s1771_s10, 16 }
 0x124   : > { %p1773_p5 = scmp.ne.s32.totalorder %s1771_s10, %s1772_s21  ;;  %s1776_s22 = scalar_lea.hbm %s2224_s3, 32 }
 0x125   : > { %854 = vst [vmem:[%s143_s15] sm:$0xff] %v852_v6  ;;  %p1777_p9 = scmp.lt.s32.totalorder %s1771_s10, %s2224_s3  ;;  %p1778_p10 = scmp.lt.s32.totalorder %s1776_s22, %s1772_s21 }
 0x126   : > { %855 = vst [vmem:[%s143_s15 + $0x8] sm:$0xff] %v853_v7  ;;  %p1774_p7 = pnand %p1773_p5, %p1914_p4 }
 0x127   : > { %p1779_p11 = por %p1778_p10, %p1777_p9 }
 0x128   : > { %p1775_p6 = pneg %p1774_p7 }
 0x12a   : > { %p1780_p12 = pnand %p1779_p11, %p1775_p6 }
 0x12c   : > { %1783 = shalt.err (!%p1780_p12)
}
 0x12d   : > { %s1849_s19 = smov 128   ;;  %s1850_s4 = smov 8  }
 0x12e   : > { %1262 = dma.vmem_to_hbm [thread:$0]  (%p1914_p4), %s872_s6, 256, %s874_s9, %s857_s14, %s1849_s19, %s1849_s19, %s1850_s4  }
 0x12f PF: > { %p1274_p13 = scmp.ge.s32.totalorder %s1842_s0, 2  ;;  %s888_s24 = sand.u32 1, %s1822_s16  }
 0x130   : > { %s889_s26 = scalar_lea.sflag [#allocation8], %s888_s24 }
 0x131   : > { %p1269_p0 = pnand %p1274_p13, %p1921_p8 }
 0x133   : > { %p1270_p1 = pneg %p1269_p0 }
 0x135   : > { %1817 = dma.done.wait (%p1270_p1), %s889_s26, 256  }
 0x136   : > { %1819 = vsyncadd (%p1270_p1), %s889_s26, 4294967040  ;;  %s25_s0 = sadd.s32 1, %s1842_s0   ;;  %s2234_s16 = smov %s1826_s17 }
 0x137   : > { %p22_p2 = scmp.ge.s32.totalorder %s25_s0, 4   ;;  %s2235_s17 = smov %s1830_s18 }
 0x138   : > { %s2236_s18 = smov %s1927_s28  ;;  %s2237_s19 = smov %s1838_s20 }
 0x139   : > { %s2238_s20 = smov %s2240_s23  ;;  %24 = sbr.rel (!%p22_p2) target bundleno = 11 (0xb), region = 267 }
 0x13e   :  { %895 = vsyncpa [#allocation7], 1 }
 0x13f   :  { %897 = vsyncpa [#allocation7 + $0x1], 1 }
 0x140   :  { %898 = vsyncpa [#allocation8], 1 }
 0x141   :  { %900 = vsyncpa [#allocation8 + $0x1], 1 }
 0x142   :  { %901 = vsyncmov [#allocation3] }
 0x145   :  { %s902_s25 = vpop.sfrf %901 }
 0x146   :  { %p1191_p4 = scmp.ne.s32.totalorder %s902_s25, 0 }
 0x148   :  { %906 = shalt.err (%p1191_p4)  }
 0x149   :  { %908 = vsyncmov [#allocation3 + $0x1] }
 0x14c   :  { %s909_s27 = vpop.sfrf %908 }
 0x14d   :  { %p1192_p8 = scmp.ne.s32.totalorder %s909_s27, 0 }
 0x14f   :  { %913 = shalt.err (%p1192_p8)  }

</bundles_post_ra>
